<compile_context>
chip_gen: v7x
topology: tpu7x:2x2x1
jax: 0.10.0
libtpu: 0.0.40
codegen_flags: <defaults>
</compile_context>

<pallas_src>
import jax
import jax.numpy as jnp
from jax.experimental import pallas as pl
from jax.experimental.pallas import tpu as pltpu

EPS = 1e-5


# ----------------------------- Pallas kernels ------------------------------

def _conv_pool_bn_kernel(c00_ref, c01_ref, c10_ref, c11_ref,
                         w_ref, b_ref, g_ref, be_ref, o_ref):
    """Fused conv (4 pooling-corner matmuls) + bias + 2x2 maxpool + ReLU + BN.

    corners c??: [Kpad, N]  (N = B*Hp*Wp on the lane axis)
    w: [Cout, Kpad],  b/g/be: [Cout, 1],  out: [Cout, N]
    """
    w = w_ref[...]
    y = jnp.maximum(
        jnp.maximum(jnp.dot(w, c00_ref[...], preferred_element_type=jnp.float32),
                    jnp.dot(w, c01_ref[...], preferred_element_type=jnp.float32)),
        jnp.maximum(jnp.dot(w, c10_ref[...], preferred_element_type=jnp.float32),
                    jnp.dot(w, c11_ref[...], preferred_element_type=jnp.float32)))
    # Per-channel bias commutes with the spatial max -> add once, after the max.
    r = jnp.maximum(y + b_ref[...], 0.0)                            # pooled + ReLU
    mean = jnp.mean(r, axis=1, keepdims=True)
    var = jnp.mean(r * r, axis=1, keepdims=True) - mean * mean      # one-pass var
    inv = jax.lax.rsqrt(var + EPS)
    o_ref[...] = (r - mean) * inv * g_ref[...] + be_ref[...]


def _mlp_head_kernel(x_ref, w1_ref, b1_ref, w2_ref, b2_ref, o_ref):
    """fc1 + ReLU + fc2 + log_softmax; the [bm, 50] intermediate stays in VMEM."""
    h = jnp.dot(x_ref[...], w1_ref[...], preferred_element_type=jnp.float32)
    h = jnp.maximum(h + b1_ref[...], 0.0)
    y = jnp.dot(h, w2_ref[...], preferred_element_type=jnp.float32) + b2_ref[...]
    m = jnp.max(y, axis=1, keepdims=True)
    s = y - m
    lse = jnp.log(jnp.sum(jnp.exp(s), axis=1, keepdims=True))
    o_ref[...] = s - lse


# --------------------------- pallas_call wrappers ---------------------------

def _full_spec(shape):
    # Whole-array block (exempt from the (8,128) divisibility rule).
    return pl.BlockSpec(shape, lambda i: (0,) * len(shape))


def conv_pool_bn_pallas(corners, w, b, g, be):
    kp, n = corners[0].shape
    cout = w.shape[0]
    return pl.pallas_call(
        _conv_pool_bn_kernel,
        out_shape=jax.ShapeDtypeStruct((cout, n), jnp.float32),
        grid=(1,),
        in_specs=[_full_spec((kp, n))] * 4
                 + [_full_spec((cout, kp))] + [_full_spec((cout, 1))] * 3,
        out_specs=_full_spec((cout, n)),
        compiler_params=pltpu.CompilerParams(
            dimension_semantics=("arbitrary",)),
    )(*corners, w, b, g, be)


def mlp_head_pallas(x, w1, b1, w2, b2, *, block_m=512):
    m, k1 = x.shape
    h = w1.shape[1]
    n = w2.shape[1]
    bm = min(block_m, m)
    return pl.pallas_call(
        _mlp_head_kernel,
        out_shape=jax.ShapeDtypeStruct((m, n), jnp.float32),
        grid=(pl.cdiv(m, bm),),
        in_specs=[pl.BlockSpec((bm, k1), lambda i: (i, 0)),
                  pl.BlockSpec((k1, h), lambda i: (0, 0)),
                  pl.BlockSpec((1, h), lambda i: (0, 0)),
                  pl.BlockSpec((h, n), lambda i: (0, 0)),
                  pl.BlockSpec((1, n), lambda i: (0, 0))],
        out_specs=pl.BlockSpec((bm, n), lambda i: (i, 0)),
        compiler_params=pltpu.CompilerParams(
            dimension_semantics=("parallel",)),  # shards batch tiles across TCs (v7x)
    )(x, w1, b1, w2, b2)


# ------------------------------- JAX glue -----------------------------------

def corner_cols(x_cm, k, k_pad):
    """x_cm: [Cin, B, H, W] channel-major.

    Returns the four corner im2col matrices (one per 2x2-pool offset), each
    [k_pad, B*Hp*Wp] in channel-major layout with the K axis zero-padded to a
    multiple of 8.  Row order = (ci, di, dj) matching torch's OIHW weight
    flatten; column order = (b, i, j) of the pooled output.
    """
    cin, b, hh, ww = x_cm.shape
    ho, wo = hh - k + 1, ww - k + 1
    hp, wp = ho // 2, wo // 2
    rows = []
    for ci in range(cin):
        for di in range(k):
            for dj in range(k):
                rows.append(x_cm[ci, :, di:di + ho, dj:dj + wo])    # [B, Ho, Wo]
    patches = jnp.stack(rows, axis=0)                               # [K, B, Ho, Wo]
    kk = cin * k * k
    if k_pad > kk:
        patches = jnp.pad(patches, ((0, k_pad - kk), (0, 0), (0, 0), (0, 0)))
    corners = [patches[:, :, pi::2, pj::2].reshape(k_pad, b * hp * wp)
               for pi in range(2) for pj in range(2)]
    return corners, hp, wp


def mnist_forward(x, p):
    # x: [B, 1, 28, 28] NCHW, exactly like PyTorch.
    B = x.shape[0]
    x_cm = jnp.transpose(x, (1, 0, 2, 3))                           # [1, B, 28, 28]

    # --- block 1: conv1(1->10, k5) + maxpool2 + relu + bn1 (fused kernel) ---
    c1, H1, W1 = corner_cols(x_cm, 5, 32)                           # 4 x [32, B*144]
    z1 = conv_pool_bn_pallas(c1, p["w1"], p["b1"], p["g1"], p["be1"])  # [10, B*144]
    z1 = z1.reshape(10, B, H1, W1)                                  # channel-major

    # --- block 2: conv2(10->20, k5) + maxpool2 + relu + bn2 (fused kernel) ---
    c2, H2, W2 = corner_cols(z1, 5, 256)                            # 4 x [256, B*16]
    z2 = conv_pool_bn_pallas(c2, p["w2"], p["b2"], p["g2"], p["be2"])  # [20, B*16]

    # --- head: torch .view(-1, 320) ordering, then fc1+relu+fc2+log_softmax ---
    x3 = jnp.transpose(z2.reshape(20, B, H2 * W2), (1, 0, 2)).reshape(B, 20 * H2 * W2)
    return mlp_head_pallas(x3, p["wf1"], p["bf1"], p["wf2"], p["bf2"])  # [B, 10]


# --------------------------- parameter handling ------------------------------

def make_torch_params(key):
    """Parameters in the PyTorch module's native shapes."""
    ks = jax.random.split(key, 12)
    f32 = jnp.float32
    return {
        "conv1_w": 0.1 * jax.random.normal(ks[0], (10, 1, 5, 5), f32),
        "conv1_b": 0.1 * jax.random.normal(ks[1], (10,), f32),
        "bn1_g": 1.0 + 0.1 * jax.random.normal(ks[2], (10,), f32),
        "bn1_b": 0.1 * jax.random.normal(ks[3], (10,), f32),
        "conv2_w": 0.05 * jax.random.normal(ks[4], (20, 10, 5, 5), f32),
        "conv2_b": 0.1 * jax.random.normal(ks[5], (20,), f32),
        "bn2_g": 1.0 + 0.1 * jax.random.normal(ks[6], (20,), f32),
        "bn2_b": 0.1 * jax.random.normal(ks[7], (20,), f32),
        "fc1_w": 0.05 * jax.random.normal(ks[8], (50, 320), f32),
        "fc1_b": 0.1 * jax.random.normal(ks[9], (50,), f32),
        "fc2_w": 0.1 * jax.random.normal(ks[10], (10, 50), f32),
        "fc2_b": 0.1 * jax.random.normal(ks[11], (10,), f32),
    }


def prepare_params(tp):
    """One-time repack into kernel layouts: conv weights flattened OIHW ->
    [Cout, K] and zero-padded on K to a multiple of 8 (25->32, 250->256);
    per-channel vectors as [C, 1] columns; fc weights transposed."""
    def pad_k(w2d, k_pad):
        return jnp.pad(w2d, ((0, 0), (0, k_pad - w2d.shape[1])))
    col = lambda v: v.reshape(-1, 1)
    row = lambda v: v.reshape(1, -1)
    return {
        "w1": pad_k(tp["conv1_w"].reshape(10, 25), 32),
        "b1": col(tp["conv1_b"]),
        "g1": col(tp["bn1_g"]), "be1": col(tp["bn1_b"]),
        "w2": pad_k(tp["conv2_w"].reshape(20, 250), 256),
        "b2": col(tp["conv2_b"]),
        "g2": col(tp["bn2_g"]), "be2": col(tp["bn2_b"]),
        "wf1": tp["fc1_w"].T, "bf1": row(tp["fc1_b"]),
        "wf2": tp["fc2_w"].T, "bf2": row(tp["fc2_b"]),
    }


# ----------------------- pure-JAX reference (checking) -----------------------

def reference_forward(x, tp):
    def conv(x, w, b):
        y = jax.lax.conv_general_dilated(
            x, w, (1, 1), "VALID", dimension_numbers=("NCHW", "OIHW", "NCHW"))
        return y + b.reshape(1, -1, 1, 1)

    def maxpool(x):
        return jax.lax.reduce_window(x, -jnp.inf, jax.lax.max,
                                     (1, 1, 2, 2), (1, 1, 2, 2), "VALID")

    def bn(x, g, be):
        mean = jnp.mean(x, axis=(0, 2, 3), keepdims=True)
        var = jnp.mean((x - mean) ** 2, axis=(0, 2, 3), keepdims=True)
        return ((x - mean) * jax.lax.rsqrt(var + EPS) * g.reshape(1, -1, 1, 1)
                + be.reshape(1, -1, 1, 1))

    h = bn(jnp.maximum(maxpool(conv(x, tp["conv1_w"], tp["conv1_b"])), 0.0),
           tp["bn1_g"], tp["bn1_b"])
    h = bn(jnp.maximum(maxpool(conv(h, tp["conv2_w"], tp["conv2_b"])), 0.0),
           tp["bn2_g"], tp["bn2_b"])
    h = h.reshape(x.shape[0], 320)
    h = jnp.maximum(h @ tp["fc1_w"].T + tp["fc1_b"], 0.0)
    h = h @ tp["fc2_w"].T + tp["fc2_b"]
    return jax.nn.log_softmax(h, axis=1)


# ---------------------------------- main -------------------------------------

if __name__ == "__main__":
    key = jax.random.PRNGKey(0)
    kx, kp = jax.random.split(key)
    # fc1 in_features=320 (two k5 convs + two 2x2 pools) implies 28x28 input.
    # B=8 keeps every lane axis >= 128 (conv2 block: 8*16 = 128 lanes).
    B = 8
    x = jax.random.normal(kx, (B, 1, 28, 28), jnp.float32)
    torch_params = make_torch_params(kp)
    params = prepare_params(torch_params)

    out = jax.block_until_ready(jax.jit(mnist_forward)(x, params))
    assert out.shape == (B, 10), out.shape

    ref = jax.block_until_ready(reference_forward(x, torch_params))
    err = jnp.max(jnp.abs(out - ref))
    assert jnp.allclose(out, ref, rtol=1e-4, atol=1e-4), f"max abs err = {err}"
    # log_softmax rows must exponentiate-sum to 1
    assert jnp.allclose(jnp.sum(jnp.exp(out), axis=1), 1.0, atol=1e-4)

    print("KERNEL_OK")
</pallas_src>

<mosaic_0001>
module attributes {stable_mosaic.version = 11 : i64} {
  func.func @_conv_pool_bn_kernel(%arg0: i32, %arg1: memref<32x1152xf32, #tpu.memory_space<vmem>>, %arg2: memref<32x1152xf32, #tpu.memory_space<vmem>>, %arg3: memref<32x1152xf32, #tpu.memory_space<vmem>>, %arg4: memref<32x1152xf32, #tpu.memory_space<vmem>>, %arg5: memref<10x32xf32, #tpu.memory_space<vmem>>, %arg6: memref<10x1xf32, #tpu.memory_space<vmem>>, %arg7: memref<10x1xf32, #tpu.memory_space<vmem>>, %arg8: memref<10x1xf32, #tpu.memory_space<vmem>>, %arg9: memref<10x1152xf32, #tpu.memory_space<vmem>>) attributes {dimension_semantics = [#tpu.dimension_semantics<arbitrary>], iteration_bounds = array<i64: 1>, scalar_prefetch = 0 : i64, scratch_operands = 0 : i64, tpu.core_type = #tpu.core_type<tc>, window_params = [{pipeline_mode = #tpu.pipeline_mode<synchronous>, transform_indices = @transform_0, window_bounds = array<i64: 32, 1152>}, {pipeline_mode = #tpu.pipeline_mode<synchronous>, transform_indices = @transform_1, window_bounds = array<i64: 32, 1152>}, {pipeline_mode = #tpu.pipeline_mode<synchronous>, transform_indices = @transform_2, window_bounds = array<i64: 32, 1152>}, {pipeline_mode = #tpu.pipeline_mode<synchronous>, transform_indices = @transform_3, window_bounds = array<i64: 32, 1152>}, {pipeline_mode = #tpu.pipeline_mode<synchronous>, transform_indices = @transform_4, window_bounds = array<i64: 10, 32>}, {pipeline_mode = #tpu.pipeline_mode<synchronous>, transform_indices = @transform_5, window_bounds = array<i64: 10, 1>}, {pipeline_mode = #tpu.pipeline_mode<synchronous>, transform_indices = @transform_6, window_bounds = array<i64: 10, 1>}, {pipeline_mode = #tpu.pipeline_mode<synchronous>, transform_indices = @transform_7, window_bounds = array<i64: 10, 1>}, {pipeline_mode = #tpu.pipeline_mode<synchronous>, transform_indices = @transform_8, window_bounds = array<i64: 10, 1152>}]} {
    %c0 = arith.constant 0 : index
    %c0_0 = arith.constant 0 : index
    %0 = vector.load %arg5[%c0, %c0_0] : memref<10x32xf32, #tpu.memory_space<vmem>>, vector<10x32xf32>
    %c0_1 = arith.constant 0 : index
    %c0_2 = arith.constant 0 : index
    %1 = vector.load %arg1[%c0_1, %c0_2] : memref<32x1152xf32, #tpu.memory_space<vmem>>, vector<32x1152xf32>
    %cst = arith.constant dense<0.000000e+00> : vector<10x1152xf32>
    %2 = tpu.matmul %0, %1, %cst {dimension_numbers = #tpu.dot_dimension_numbers<[1], [0], [0], [1], [0, 0, 1, 1], [], []>} : vector<10x32xf32>, vector<32x1152xf32>, vector<10x1152xf32> -> vector<10x1152xf32>
    %c0_3 = arith.constant 0 : index
    %c0_4 = arith.constant 0 : index
    %3 = vector.load %arg2[%c0_3, %c0_4] : memref<32x1152xf32, #tpu.memory_space<vmem>>, vector<32x1152xf32>
    %cst_5 = arith.constant dense<0.000000e+00> : vector<10x1152xf32>
    %4 = tpu.matmul %0, %3, %cst_5 {dimension_numbers = #tpu.dot_dimension_numbers<[1], [0], [0], [1], [0, 0, 1, 1], [], []>} : vector<10x32xf32>, vector<32x1152xf32>, vector<10x1152xf32> -> vector<10x1152xf32>
    %5 = arith.maximumf %2, %4 : vector<10x1152xf32>
    %c0_6 = arith.constant 0 : index
    %c0_7 = arith.constant 0 : index
    %6 = vector.load %arg3[%c0_6, %c0_7] : memref<32x1152xf32, #tpu.memory_space<vmem>>, vector<32x1152xf32>
    %cst_8 = arith.constant dense<0.000000e+00> : vector<10x1152xf32>
    %7 = tpu.matmul %0, %6, %cst_8 {dimension_numbers = #tpu.dot_dimension_numbers<[1], [0], [0], [1], [0, 0, 1, 1], [], []>} : vector<10x32xf32>, vector<32x1152xf32>, vector<10x1152xf32> -> vector<10x1152xf32>
    %c0_9 = arith.constant 0 : index
    %c0_10 = arith.constant 0 : index
    %8 = vector.load %arg4[%c0_9, %c0_10] : memref<32x1152xf32, #tpu.memory_space<vmem>>, vector<32x1152xf32>
    %cst_11 = arith.constant dense<0.000000e+00> : vector<10x1152xf32>
    %9 = tpu.matmul %0, %8, %cst_11 {dimension_numbers = #tpu.dot_dimension_numbers<[1], [0], [0], [1], [0, 0, 1, 1], [], []>} : vector<10x32xf32>, vector<32x1152xf32>, vector<10x1152xf32> -> vector<10x1152xf32>
    %10 = arith.maximumf %7, %9 : vector<10x1152xf32>
    %11 = arith.maximumf %5, %10 : vector<10x1152xf32>
    %c0_12 = arith.constant 0 : index
    %c0_13 = arith.constant 0 : index
    %12 = vector.load %arg6[%c0_12, %c0_13] : memref<10x1xf32, #tpu.memory_space<vmem>>, vector<10x1xf32>
    %13 = vector.broadcast %12 : vector<10x1xf32> to vector<10x1152xf32>
    %14 = arith.addf %11, %13 : vector<10x1152xf32>
    %cst_14 = arith.constant 0.000000e+00 : f32
    %15 = vector.broadcast %cst_14 : f32 to vector<10x1152xf32>
    %16 = arith.maximumf %14, %15 : vector<10x1152xf32>
    %cst_15 = arith.constant dense<0.000000e+00> : vector<10xf32>
    %17 = vector.multi_reduction <add>, %16, %cst_15 [1] : vector<10x1152xf32> to vector<10xf32>
    %18 = vector.shape_cast %17 : vector<10xf32> to vector<10x1xf32>
    %cst_16 = arith.constant 1.152000e+03 : f32
    %19 = vector.broadcast %cst_16 : f32 to vector<10x1xf32>
    %20 = arith.divf %18, %19 : vector<10x1xf32>
    %21 = arith.mulf %16, %16 : vector<10x1152xf32>
    %cst_17 = arith.constant dense<0.000000e+00> : vector<10xf32>
    %22 = vector.multi_reduction <add>, %21, %cst_17 [1] : vector<10x1152xf32> to vector<10xf32>
    %23 = vector.shape_cast %22 : vector<10xf32> to vector<10x1xf32>
    %cst_18 = arith.constant 1.152000e+03 : f32
    %24 = vector.broadcast %cst_18 : f32 to vector<10x1xf32>
    %25 = arith.divf %23, %24 : vector<10x1xf32>
    %26 = arith.mulf %20, %20 : vector<10x1xf32>
    %27 = arith.subf %25, %26 : vector<10x1xf32>
    %cst_19 = arith.constant 9.99999974E-6 : f32
    %28 = vector.broadcast %cst_19 : f32 to vector<10x1xf32>
    %29 = arith.addf %27, %28 : vector<10x1xf32>
    %30 = math.rsqrt %29 : vector<10x1xf32>
    %31 = vector.broadcast %20 : vector<10x1xf32> to vector<10x1152xf32>
    %32 = arith.subf %16, %31 : vector<10x1152xf32>
    %33 = vector.broadcast %30 : vector<10x1xf32> to vector<10x1152xf32>
    %34 = arith.mulf %32, %33 : vector<10x1152xf32>
    %c0_20 = arith.constant 0 : index
    %c0_21 = arith.constant 0 : index
    %35 = vector.load %arg7[%c0_20, %c0_21] : memref<10x1xf32, #tpu.memory_space<vmem>>, vector<10x1xf32>
    %36 = vector.broadcast %35 : vector<10x1xf32> to vector<10x1152xf32>
    %37 = arith.mulf %34, %36 : vector<10x1152xf32>
    %c0_22 = arith.constant 0 : index
    %c0_23 = arith.constant 0 : index
    %38 = vector.load %arg8[%c0_22, %c0_23] : memref<10x1xf32, #tpu.memory_space<vmem>>, vector<10x1xf32>
    %39 = vector.broadcast %38 : vector<10x1xf32> to vector<10x1152xf32>
    %40 = arith.addf %37, %39 : vector<10x1152xf32>
    %c0_24 = arith.constant 0 : index
    %c0_25 = arith.constant 0 : index
    %41 = vector.load %arg9[%c0_24, %c0_25] : memref<10x1152xf32, #tpu.memory_space<vmem>>, vector<10x1152xf32>
    tpu.vector_store %arg9[%c0_24, %c0_25], %40 {strides = array<i32>} : memref<10x1152xf32, #tpu.memory_space<vmem>>, vector<10x1152xf32>,
    return
  }
  func.func @transform_0(%arg0: i32) -> (i32, i32) {
    %c0_i32 = arith.constant 0 : i32
    %c0_i32_0 = arith.constant 0 : i32
    %c0_i32_1 = arith.constant 0 : i32
    return %c0_i32, %c0_i32_0 : i32, i32
  }
  func.func @transform_1(%arg0: i32) -> (i32, i32) {
    %c0_i32 = arith.constant 0 : i32
    %c0_i32_0 = arith.constant 0 : i32
    %c0_i32_1 = arith.constant 0 : i32
    return %c0_i32, %c0_i32_0 : i32, i32
  }
  func.func @transform_2(%arg0: i32) -> (i32, i32) {
    %c0_i32 = arith.constant 0 : i32
    %c0_i32_0 = arith.constant 0 : i32
    %c0_i32_1 = arith.constant 0 : i32
    return %c0_i32, %c0_i32_0 : i32, i32
  }
  func.func @transform_3(%arg0: i32) -> (i32, i32) {
    %c0_i32 = arith.constant 0 : i32
    %c0_i32_0 = arith.constant 0 : i32
    %c0_i32_1 = arith.constant 0 : i32
    return %c0_i32, %c0_i32_0 : i32, i32
  }
  func.func @transform_4(%arg0: i32) -> (i32, i32) {
    %c0_i32 = arith.constant 0 : i32
    %c0_i32_0 = arith.constant 0 : i32
    %c0_i32_1 = arith.constant 0 : i32
    return %c0_i32, %c0_i32_0 : i32, i32
  }
  func.func @transform_5(%arg0: i32) -> (i32, i32) {
    %c0_i32 = arith.constant 0 : i32
    %c0_i32_0 = arith.constant 0 : i32
    %c0_i32_1 = arith.constant 0 : i32
    return %c0_i32, %c0_i32_0 : i32, i32
  }
  func.func @transform_6(%arg0: i32) -> (i32, i32) {
    %c0_i32 = arith.constant 0 : i32
    %c0_i32_0 = arith.constant 0 : i32
    %c0_i32_1 = arith.constant 0 : i32
    return %c0_i32, %c0_i32_0 : i32, i32
  }
  func.func @transform_7(%arg0: i32) -> (i32, i32) {
    %c0_i32 = arith.constant 0 : i32
    %c0_i32_0 = arith.constant 0 : i32
    %c0_i32_1 = arith.constant 0 : i32
    return %c0_i32, %c0_i32_0 : i32, i32
  }
  func.func @transform_8(%arg0: i32) -> (i32, i32) {
    %c0_i32 = arith.constant 0 : i32
    %c0_i32_0 = arith.constant 0 : i32
    %c0_i32_1 = arith.constant 0 : i32
    return %c0_i32, %c0_i32_0 : i32, i32
  }
}

module attributes {stable_mosaic.version = 11 : i64} {
  func.func @_conv_pool_bn_kernel(%arg0: i32, %arg1: memref<256x128xf32, #tpu.memory_space<vmem>>, %arg2: memref<256x128xf32, #tpu.memory_space<vmem>>, %arg3: memref<256x128xf32, #tpu.memory_space<vmem>>, %arg4: memref<256x128xf32, #tpu.memory_space<vmem>>, %arg5: memref<20x256xf32, #tpu.memory_space<vmem>>, %arg6: memref<20x1xf32, #tpu.memory_space<vmem>>, %arg7: memref<20x1xf32, #tpu.memory_space<vmem>>, %arg8: memref<20x1xf32, #tpu.memory_space<vmem>>, %arg9: memref<20x128xf32, #tpu.memory_space<vmem>>) attributes {dimension_semantics = [#tpu.dimension_semantics<arbitrary>], iteration_bounds = array<i64: 1>, scalar_prefetch = 0 : i64, scratch_operands = 0 : i64, tpu.core_type = #tpu.core_type<tc>, window_params = [{pipeline_mode = #tpu.pipeline_mode<synchronous>, transform_indices = @transform_0, window_bounds = array<i64: 256, 128>}, {pipeline_mode = #tpu.pipeline_mode<synchronous>, transform_indices = @transform_1, window_bounds = array<i64: 256, 128>}, {pipeline_mode = #tpu.pipeline_mode<synchronous>, transform_indices = @transform_2, window_bounds = array<i64: 256, 128>}, {pipeline_mode = #tpu.pipeline_mode<synchronous>, transform_indices = @transform_3, window_bounds = array<i64: 256, 128>}, {pipeline_mode = #tpu.pipeline_mode<synchronous>, transform_indices = @transform_4, window_bounds = array<i64: 20, 256>}, {pipeline_mode = #tpu.pipeline_mode<synchronous>, transform_indices = @transform_5, window_bounds = array<i64: 20, 1>}, {pipeline_mode = #tpu.pipeline_mode<synchronous>, transform_indices = @transform_6, window_bounds = array<i64: 20, 1>}, {pipeline_mode = #tpu.pipeline_mode<synchronous>, transform_indices = @transform_7, window_bounds = array<i64: 20, 1>}, {pipeline_mode = #tpu.pipeline_mode<synchronous>, transform_indices = @transform_8, window_bounds = array<i64: 20, 128>}]} {
    %c0 = arith.constant 0 : index
    %c0_0 = arith.constant 0 : index
    %0 = vector.load %arg5[%c0, %c0_0] : memref<20x256xf32, #tpu.memory_space<vmem>>, vector<20x256xf32>
    %c0_1 = arith.constant 0 : index
    %c0_2 = arith.constant 0 : index
    %1 = vector.load %arg1[%c0_1, %c0_2] : memref<256x128xf32, #tpu.memory_space<vmem>>, vector<256x128xf32>
    %cst = arith.constant dense<0.000000e+00> : vector<20x128xf32>
    %2 = tpu.matmul %0, %1, %cst {dimension_numbers = #tpu.dot_dimension_numbers<[1], [0], [0], [1], [0, 0, 1, 1], [], []>} : vector<20x256xf32>, vector<256x128xf32>, vector<20x128xf32> -> vector<20x128xf32>
    %c0_3 = arith.constant 0 : index
    %c0_4 = arith.constant 0 : index
    %3 = vector.load %arg2[%c0_3, %c0_4] : memref<256x128xf32, #tpu.memory_space<vmem>>, vector<256x128xf32>
    %cst_5 = arith.constant dense<0.000000e+00> : vector<20x128xf32>
    %4 = tpu.matmul %0, %3, %cst_5 {dimension_numbers = #tpu.dot_dimension_numbers<[1], [0], [0], [1], [0, 0, 1, 1], [], []>} : vector<20x256xf32>, vector<256x128xf32>, vector<20x128xf32> -> vector<20x128xf32>
    %5 = arith.maximumf %2, %4 : vector<20x128xf32>
    %c0_6 = arith.constant 0 : index
    %c0_7 = arith.constant 0 : index
    %6 = vector.load %arg3[%c0_6, %c0_7] : memref<256x128xf32, #tpu.memory_space<vmem>>, vector<256x128xf32>
    %cst_8 = arith.constant dense<0.000000e+00> : vector<20x128xf32>
    %7 = tpu.matmul %0, %6, %cst_8 {dimension_numbers = #tpu.dot_dimension_numbers<[1], [0], [0], [1], [0, 0, 1, 1], [], []>} : vector<20x256xf32>, vector<256x128xf32>, vector<20x128xf32> -> vector<20x128xf32>
    %c0_9 = arith.constant 0 : index
    %c0_10 = arith.constant 0 : index
    %8 = vector.load %arg4[%c0_9, %c0_10] : memref<256x128xf32, #tpu.memory_space<vmem>>, vector<256x128xf32>
    %cst_11 = arith.constant dense<0.000000e+00> : vector<20x128xf32>
    %9 = tpu.matmul %0, %8, %cst_11 {dimension_numbers = #tpu.dot_dimension_numbers<[1], [0], [0], [1], [0, 0, 1, 1], [], []>} : vector<20x256xf32>, vector<256x128xf32>, vector<20x128xf32> -> vector<20x128xf32>
    %10 = arith.maximumf %7, %9 : vector<20x128xf32>
    %11 = arith.maximumf %5, %10 : vector<20x128xf32>
    %c0_12 = arith.constant 0 : index
    %c0_13 = arith.constant 0 : index
    %12 = vector.load %arg6[%c0_12, %c0_13] : memref<20x1xf32, #tpu.memory_space<vmem>>, vector<20x1xf32>
    %13 = vector.broadcast %12 : vector<20x1xf32> to vector<20x128xf32>
    %14 = arith.addf %11, %13 : vector<20x128xf32>
    %cst_14 = arith.constant 0.000000e+00 : f32
    %15 = vector.broadcast %cst_14 : f32 to vector<20x128xf32>
    %16 = arith.maximumf %14, %15 : vector<20x128xf32>
    %cst_15 = arith.constant dense<0.000000e+00> : vector<20xf32>
    %17 = vector.multi_reduction <add>, %16, %cst_15 [1] : vector<20x128xf32> to vector<20xf32>
    %18 = vector.shape_cast %17 : vector<20xf32> to vector<20x1xf32>
    %cst_16 = arith.constant 1.280000e+02 : f32
    %19 = vector.broadcast %cst_16 : f32 to vector<20x1xf32>
    %20 = arith.divf %18, %19 : vector<20x1xf32>
    %21 = arith.mulf %16, %16 : vector<20x128xf32>
    %cst_17 = arith.constant dense<0.000000e+00> : vector<20xf32>
    %22 = vector.multi_reduction <add>, %21, %cst_17 [1] : vector<20x128xf32> to vector<20xf32>
    %23 = vector.shape_cast %22 : vector<20xf32> to vector<20x1xf32>
    %cst_18 = arith.constant 1.280000e+02 : f32
    %24 = vector.broadcast %cst_18 : f32 to vector<20x1xf32>
    %25 = arith.divf %23, %24 : vector<20x1xf32>
    %26 = arith.mulf %20, %20 : vector<20x1xf32>
    %27 = arith.subf %25, %26 : vector<20x1xf32>
    %cst_19 = arith.constant 9.99999974E-6 : f32
    %28 = vector.broadcast %cst_19 : f32 to vector<20x1xf32>
    %29 = arith.addf %27, %28 : vector<20x1xf32>
    %30 = math.rsqrt %29 : vector<20x1xf32>
    %31 = vector.broadcast %20 : vector<20x1xf32> to vector<20x128xf32>
    %32 = arith.subf %16, %31 : vector<20x128xf32>
    %33 = vector.broadcast %30 : vector<20x1xf32> to vector<20x128xf32>
    %34 = arith.mulf %32, %33 : vector<20x128xf32>
    %c0_20 = arith.constant 0 : index
    %c0_21 = arith.constant 0 : index
    %35 = vector.load %arg7[%c0_20, %c0_21] : memref<20x1xf32, #tpu.memory_space<vmem>>, vector<20x1xf32>
    %36 = vector.broadcast %35 : vector<20x1xf32> to vector<20x128xf32>
    %37 = arith.mulf %34, %36 : vector<20x128xf32>
    %c0_22 = arith.constant 0 : index
    %c0_23 = arith.constant 0 : index
    %38 = vector.load %arg8[%c0_22, %c0_23] : memref<20x1xf32, #tpu.memory_space<vmem>>, vector<20x1xf32>
    %39 = vector.broadcast %38 : vector<20x1xf32> to vector<20x128xf32>
    %40 = arith.addf %37, %39 : vector<20x128xf32>
    %c0_24 = arith.constant 0 : index
    %c0_25 = arith.constant 0 : index
    %41 = vector.load %arg9[%c0_24, %c0_25] : memref<20x128xf32, #tpu.memory_space<vmem>>, vector<20x128xf32>
    tpu.vector_store %arg9[%c0_24, %c0_25], %40 {strides = array<i32>} : memref<20x128xf32, #tpu.memory_space<vmem>>, vector<20x128xf32>,
    return
  }
  func.func @transform_0(%arg0: i32) -> (i32, i32) {
    %c0_i32 = arith.constant 0 : i32
    %c0_i32_0 = arith.constant 0 : i32
    %c0_i32_1 = arith.constant 0 : i32
    return %c0_i32, %c0_i32_0 : i32, i32
  }
  func.func @transform_1(%arg0: i32) -> (i32, i32) {
    %c0_i32 = arith.constant 0 : i32
    %c0_i32_0 = arith.constant 0 : i32
    %c0_i32_1 = arith.constant 0 : i32
    return %c0_i32, %c0_i32_0 : i32, i32
  }
  func.func @transform_2(%arg0: i32) -> (i32, i32) {
    %c0_i32 = arith.constant 0 : i32
    %c0_i32_0 = arith.constant 0 : i32
    %c0_i32_1 = arith.constant 0 : i32
    return %c0_i32, %c0_i32_0 : i32, i32
  }
  func.func @transform_3(%arg0: i32) -> (i32, i32) {
    %c0_i32 = arith.constant 0 : i32
    %c0_i32_0 = arith.constant 0 : i32
    %c0_i32_1 = arith.constant 0 : i32
    return %c0_i32, %c0_i32_0 : i32, i32
  }
  func.func @transform_4(%arg0: i32) -> (i32, i32) {
    %c0_i32 = arith.constant 0 : i32
    %c0_i32_0 = arith.constant 0 : i32
    %c0_i32_1 = arith.constant 0 : i32
    return %c0_i32, %c0_i32_0 : i32, i32
  }
  func.func @transform_5(%arg0: i32) -> (i32, i32) {
    %c0_i32 = arith.constant 0 : i32
    %c0_i32_0 = arith.constant 0 : i32
    %c0_i32_1 = arith.constant 0 : i32
    return %c0_i32, %c0_i32_0 : i32, i32
  }
  func.func @transform_6(%arg0: i32) -> (i32, i32) {
    %c0_i32 = arith.constant 0 : i32
    %c0_i32_0 = arith.constant 0 : i32
    %c0_i32_1 = arith.constant 0 : i32
    return %c0_i32, %c0_i32_0 : i32, i32
  }
  func.func @transform_7(%arg0: i32) -> (i32, i32) {
    %c0_i32 = arith.constant 0 : i32
    %c0_i32_0 = arith.constant 0 : i32
    %c0_i32_1 = arith.constant 0 : i32
    return %c0_i32, %c0_i32_0 : i32, i32
  }
  func.func @transform_8(%arg0: i32) -> (i32, i32) {
    %c0_i32 = arith.constant 0 : i32
    %c0_i32_0 = arith.constant 0 : i32
    %c0_i32_1 = arith.constant 0 : i32
    return %c0_i32, %c0_i32_0 : i32, i32
  }
}

module attributes {stable_mosaic.version = 11 : i64} {
  func.func @_mlp_head_kernel(%arg0: i32, %arg1: memref<8x320xf32, #tpu.memory_space<vmem>>, %arg2: memref<320x50xf32, #tpu.memory_space<vmem>>, %arg3: memref<1x50xf32, #tpu.memory_space<vmem>>, %arg4: memref<50x10xf32, #tpu.memory_space<vmem>>, %arg5: memref<1x10xf32, #tpu.memory_space<vmem>>, %arg6: memref<8x10xf32, #tpu.memory_space<vmem>>) attributes {dimension_semantics = [#tpu.dimension_semantics<parallel>], iteration_bounds = array<i64: 1>, scalar_prefetch = 0 : i64, scratch_operands = 0 : i64, tpu.core_type = #tpu.core_type<tc>, window_params = [{transform_indices = @transform_0, window_bounds = array<i64: 8, 320>}, {pipeline_mode = #tpu.pipeline_mode<synchronous>, transform_indices = @transform_1, window_bounds = array<i64: 320, 50>}, {pipeline_mode = #tpu.pipeline_mode<synchronous>, transform_indices = @transform_2, window_bounds = array<i64: 1, 50>}, {pipeline_mode = #tpu.pipeline_mode<synchronous>, transform_indices = @transform_3, window_bounds = array<i64: 50, 10>}, {pipeline_mode = #tpu.pipeline_mode<synchronous>, transform_indices = @transform_4, window_bounds = array<i64: 1, 10>}, {transform_indices = @transform_5, window_bounds = array<i64: 8, 10>}]} {
    %c0 = arith.constant 0 : index
    %c0_0 = arith.constant 0 : index
    %0 = vector.load %arg1[%c0, %c0_0] : memref<8x320xf32, #tpu.memory_space<vmem>>, vector<8x320xf32>
    %c0_1 = arith.constant 0 : index
    %c0_2 = arith.constant 0 : index
    %1 = vector.load %arg2[%c0_1, %c0_2] : memref<320x50xf32, #tpu.memory_space<vmem>>, vector<320x50xf32>
    %cst = arith.constant dense<0.000000e+00> : vector<8x50xf32>
    %2 = tpu.matmul %0, %1, %cst {dimension_numbers = #tpu.dot_dimension_numbers<[1], [0], [0], [1], [0, 0, 1, 1], [], []>} : vector<8x320xf32>, vector<320x50xf32>, vector<8x50xf32> -> vector<8x50xf32>
    %c0_3 = arith.constant 0 : index
    %c0_4 = arith.constant 0 : index
    %3 = vector.load %arg3[%c0_3, %c0_4] : memref<1x50xf32, #tpu.memory_space<vmem>>, vector<1x50xf32>
    %4 = vector.broadcast %3 : vector<1x50xf32> to vector<8x50xf32>
    %5 = arith.addf %2, %4 : vector<8x50xf32>
    %cst_5 = arith.constant 0.000000e+00 : f32
    %6 = vector.broadcast %cst_5 : f32 to vector<8x50xf32>
    %7 = arith.maximumf %5, %6 : vector<8x50xf32>
    %c0_6 = arith.constant 0 : index
    %c0_7 = arith.constant 0 : index
    %8 = vector.load %arg4[%c0_6, %c0_7] : memref<50x10xf32, #tpu.memory_space<vmem>>, vector<50x10xf32>
    %cst_8 = arith.constant dense<0.000000e+00> : vector<8x10xf32>
    %9 = tpu.matmul %7, %8, %cst_8 {dimension_numbers = #tpu.dot_dimension_numbers<[1], [0], [0], [1], [0, 0, 1, 1], [], []>} : vector<8x50xf32>, vector<50x10xf32>, vector<8x10xf32> -> vector<8x10xf32>
    %c0_9 = arith.constant 0 : index
    %c0_10 = arith.constant 0 : index
    %10 = vector.load %arg5[%c0_9, %c0_10] : memref<1x10xf32, #tpu.memory_space<vmem>>, vector<1x10xf32>
    %11 = vector.broadcast %10 : vector<1x10xf32> to vector<8x10xf32>
    %12 = arith.addf %9, %11 : vector<8x10xf32>
    %cst_11 = arith.constant dense<0xFF800000> : vector<8xf32>
    %13 = vector.multi_reduction <maximumf>, %12, %cst_11 [1] : vector<8x10xf32> to vector<8xf32>
    %14 = vector.shape_cast %13 : vector<8xf32> to vector<8x1xf32>
    %15 = vector.broadcast %14 : vector<8x1xf32> to vector<8x10xf32>
    %16 = arith.subf %12, %15 : vector<8x10xf32>
    %17 = math.exp %16 : vector<8x10xf32>
    %cst_12 = arith.constant dense<0.000000e+00> : vector<8xf32>
    %18 = vector.multi_reduction <add>, %17, %cst_12 [1] : vector<8x10xf32> to vector<8xf32>
    %19 = vector.shape_cast %18 : vector<8xf32> to vector<8x1xf32>
    %20 = math.log %19 : vector<8x1xf32>
    %21 = vector.broadcast %20 : vector<8x1xf32> to vector<8x10xf32>
    %22 = arith.subf %16, %21 : vector<8x10xf32>
    %c0_13 = arith.constant 0 : index
    %c0_14 = arith.constant 0 : index
    %23 = vector.load %arg6[%c0_13, %c0_14] : memref<8x10xf32, #tpu.memory_space<vmem>>, vector<8x10xf32>
    tpu.vector_store %arg6[%c0_13, %c0_14], %22 {strides = array<i32>} : memref<8x10xf32, #tpu.memory_space<vmem>>, vector<8x10xf32>,
    return
  }
  func.func @transform_0(%arg0: i32) -> (i32, i32) {
    %c0_i32 = arith.constant 0 : i32
    %c0_i32_0 = arith.constant 0 : i32
    return %arg0, %c0_i32 : i32, i32
  }
  func.func @transform_1(%arg0: i32) -> (i32, i32) {
    %c0_i32 = arith.constant 0 : i32
    %c0_i32_0 = arith.constant 0 : i32
    %c0_i32_1 = arith.constant 0 : i32
    return %c0_i32, %c0_i32_0 : i32, i32
  }
  func.func @transform_2(%arg0: i32) -> (i32, i32) {
    %c0_i32 = arith.constant 0 : i32
    %c0_i32_0 = arith.constant 0 : i32
    %c0_i32_1 = arith.constant 0 : i32
    return %c0_i32, %c0_i32_0 : i32, i32
  }
  func.func @transform_3(%arg0: i32) -> (i32, i32) {
    %c0_i32 = arith.constant 0 : i32
    %c0_i32_0 = arith.constant 0 : i32
    %c0_i32_1 = arith.constant 0 : i32
    return %c0_i32, %c0_i32_0 : i32, i32
  }
  func.func @transform_4(%arg0: i32) -> (i32, i32) {
    %c0_i32 = arith.constant 0 : i32
    %c0_i32_0 = arith.constant 0 : i32
    %c0_i32_1 = arith.constant 0 : i32
    return %c0_i32, %c0_i32_0 : i32, i32
  }
  func.func @transform_5(%arg0: i32) -> (i32, i32) {
    %c0_i32 = arith.constant 0 : i32
    %c0_i32_0 = arith.constant 0 : i32
    return %arg0, %c0_i32 : i32, i32
  }
}

</mosaic_0001>

<bundles_post_ra>
// kernel: mnist_forward.3
= control target key start
LH: loop header
LB: loop body
LE: loop exit
PB: predicated region body
PF: predicated region fallthrough
CT: control target
= control target key end

     0   :  { %v2300_v3 = vmov 0.0   ;;  %v2301_v8 = vmov 0   ;;  %vm67_vm0 = vcmask 261120   ;;  %vm1826_vm1 = vcmask 1041408   ;;  %s3318_s0 = inlined_call_operand.vmem [shape: f32[32,1152], index: 0, kind: input, shape index: {}]   ;;  %s3319_s4 = inlined_call_operand.vmem [shape: f32[10,32], index: 4, kind: input, shape index: {}]   ;;  %s3320_s1 = inlined_call_operand.vmem [shape: f32[32,1152], index: 1, kind: input, shape index: {}]   ;;  %s3321_s2 = inlined_call_operand.vmem [shape: f32[32,1152], index: 2, kind: input, shape index: {}]   ;;  %s3322_s5 = inlined_call_operand.vmem [shape: f32[10,1], index: 5, kind: input, shape index: {}]   ;;  %s3323_s3 = inlined_call_operand.vmem [shape: f32[32,1152], index: 3, kind: input, shape index: {}]   ;;  %s3324_s6 = inlined_call_operand.vmem [shape: f32[10,1], index: 6, kind: input, shape index: {}]   ;;  %s3325_s7 = inlined_call_operand.vmem [shape: f32[10,1], index: 7, kind: input, shape index: {}]   ;;  %s3326_s8 = inlined_call_operand.vmem [shape: f32[10,1152], index: 8, kind: output, shape index: {}]  }
   0x1   :  { %v32_v0 = vld [vmem:[%s3318_s0 + $0x8] sm:$0xff]  ;;  %v41_v1 = vld [vmem:[%s3318_s0 + $0x50] sm:$0xff]  ;;  %v34_v2 = vld [vmem:[%s3318_s0 + $0x18] sm:$0xff]  ;;  %138 = vmatprep.mubr.f32.mxu0 %v2300_v3  ;;  %215 = vmatprep.mubr.f32.mxu1 %v2300_v3 }
   0x2   :  { %v2132_v4 = vpack.c.bf16 %v41_v1, %v32_v0  ;;  %v43_v5 = vld [vmem:[%s3318_s0 + $0x60] sm:$0xff]  ;;  %v40_v7 = vld [vmem:[%s3318_s0 + $0x48] sm:$0xff]  ;;  %2294 = vset.pattern.permute.xlu0 %v2301_v8  ;;  %2295 = vset.pattern.permute.xlu1 %v2301_v8  ;;  %v33_v11 = vld [vmem:[%s3318_s0 + $0x10] sm:$0xff] }
   0x3   :  { %v31_v6 = vld [vmem:[%s3318_s0] sm:$0xff]  ;;  %v2140_v9 = vpack.c.bf16 %v43_v5, %v34_v2  ;;  %v42_v12 = vld [vmem:[%s3318_s0 + $0x58] sm:$0xff]  ;;  %v52_v16 = vld [vmem:[%s3318_s0 + $0xa8] sm:$0xff] }
   0x4   :  { %v2134_v10 = vpack.c.bf16 %v40_v7, %v31_v6  ;;  %v50_v13 = vld [vmem:[%s3318_s0 + $0x98] sm:$0xff]  ;;  %2133 = vmatprep.subr.bf16.mxu0 %v2132_v4  ;;  %v2142_v14 = vpack.c.bf16 %v42_v12, %v33_v11  ;;  %v59_v15 = vld [vmem:[%s3318_s0 + $0xe0] sm:$0xff]  ;;  %v61_v17 = vld [vmem:[%s3318_s0 + $0xf0] sm:$0xff] }
   0x5   :  { %2141 = vmatprep.subr.bf16.mxu1 %v2140_v9  ;;  %v2136_v18 = vpack.c.bf16 %v59_v15, %v50_v13  ;;  %v2144_v19 = vpack.c.bf16 %v61_v17, %v52_v16  ;;  %v49_v20 = vld [vmem:[%s3318_s0 + $0x90] sm:$0xff]  ;;  %v58_v21 = vld [vmem:[%s3318_s0 + $0xd8] sm:$0xff]  ;;  %v51_v22 = vld [vmem:[%s3318_s0 + $0xa0] sm:$0xff] }
   0x6   :  { %2135 = vmatpush1.bf16.msra.mxu0 %v2134_v10  ;;  %2143 = vmatpush1.bf16.msra.mxu1 %v2142_v14  ;;  %v2138_v23 = vpack.c.bf16 %v58_v21, %v49_v20  ;;  %v60_v24 = vld [vmem:[%s3318_s0 + $0xe8] sm:$0xff]  ;;  %v45_v27 = vld [vmem:[%s3318_s0 + $0x70] sm:$0xff]  ;;  %v38_v28 = vld [vmem:[%s3318_s0 + $0x38] sm:$0xff] }
   0x7   :  { %v36_v25 = vld [vmem:[%s3318_s0 + $0x28] sm:$0xff]  ;;  %2137 = vmatprep.subr.bf16.mxu0 %v2136_v18  ;;  %2145 = vmatprep.subr.bf16.mxu1 %v2144_v19  ;;  %v2146_v26 = vpack.c.bf16 %v60_v24, %v51_v22  ;;  %v47_v29 = vld [vmem:[%s3318_s0 + $0x80] sm:$0xff]  ;;  %v37_v34 = vld [vmem:[%s3318_s0 + $0x30] sm:$0xff] }
   0x8   :  { %v2148_v30 = vpack.c.bf16 %v45_v27, %v36_v25  ;;  %v2156_v31 = vpack.c.bf16 %v47_v29, %v38_v28  ;;  %v35_v32 = vld [vmem:[%s3318_s0 + $0x20] sm:$0xff]  ;;  %v44_v33 = vld [vmem:[%s3318_s0 + $0x68] sm:$0xff]  ;;  %v46_v37 = vld [vmem:[%s3318_s0 + $0x78] sm:$0xff] }
   0x9   :  { %v2421_v35 = vld [vmem:[%s3319_s4] sm:$0xff]  ;;  %v2150_v36 = vpack.c.bf16 %v44_v33, %v35_v32  ;;  %v54_v38 = vld [vmem:[%s3318_s0 + $0xb8] sm:$0xff]  ;;  %v2158_v39 = vpack.c.bf16 %v46_v37, %v37_v34  ;;  %v56_v41 = vld [vmem:[%s3318_s0 + $0xc8] sm:$0xff] }
   0xa   :  { %2139 = vmatpush1.bf16.msra.mxu0 %v2138_v23  ;;  %2147 = vmatpush1.bf16.msra.mxu1 %v2146_v26  ;;  %v63_v40 = vld [vmem:[%s3318_s0 + $0x100] sm:$0xff]  ;;  %v65_v42 = vld [vmem:[%s3318_s0 + $0x110] sm:$0xff]  ;;  %v62_v45 = vld [vmem:[%s3318_s0 + $0xf8] sm:$0xff] }
   0xb   :  { %2149 = vmatprep.subr.bf16.mxu0 %v2148_v30  ;;  %2157 = vmatprep.subr.bf16.mxu1 %v2156_v31  ;;  %v2152_v43 = vpack.c.bf16 %v63_v40, %v54_v38  ;;  %v53_v44 = vld [vmem:[%s3318_s0 + $0xb0] sm:$0xff]  ;;  %v55_v46 = vld [vmem:[%s3318_s0 + $0xc0] sm:$0xff]  ;;  %v2160_v47 = vpack.c.bf16 %v65_v42, %v56_v41  ;;  %v64_v48 = vld [vmem:[%s3318_s0 + $0x108] sm:$0xff] }
   0xc   :  { %v39_v49 = vld [vmem:[%s3318_s0 + $0x40] sm:$0xff]  ;;  %v48_v50 = vld [vmem:[%s3318_s0 + $0x88] sm:$0xff]  ;;  %v2154_v52 = vpack.c.bf16 %v62_v45, %v53_v44  ;;  %v467_v54 = vld [vmem:[%s3320_s1 + $0x50] sm:$0xff]  ;;  %v2162_v55 = vpack.c.bf16 %v64_v48, %v55_v46 }
   0xd   :  { %2024 = vmatmul.mubr.msk.f32.vlgmr.msra.gmra.mrb[0].mxu0 %vm67_vm0, %v2421_v35  ;;  %2026 = vmatmul.mubr.msk.f32.vlgmr.msra.gmra.mrb[0].mxu1 %vm67_vm0, %v2421_v35  ;;  %v2463_v51 = vld [vmem:[%s3319_s4 + $0x8] sm:$0x3]  ;;  %v2164_v56 = vpack.c.bf16 %v48_v50, %v39_v49  ;;  %v457_v57 = vld [vmem:[%s3320_s1] sm:$0xff]  ;;  %v57_v60 = vld [vmem:[%s3318_s0 + $0xd0] sm:$0xff] }
   0xe   :  { %2151 = vmatpush1.bf16.msra.mxu0 %v2150_v36  ;;  %v458_v53 = vld [vmem:[%s3320_s1 + $0x8] sm:$0xff]  ;;  %2159 = vmatpush1.bf16.msra.mxu1 %v2158_v39  ;;  %v66_v61 = vld [vmem:[%s3318_s0 + $0x118] sm:$0xff]  ;;  %v485_v63 = vld [vmem:[%s3320_s1 + $0xe0] sm:$0xff] }
   0xf   :  { %144 = vmatprep.mubr.f32.mxu0 %v2300_v3  ;;  %221 = vmatprep.mubr.f32.mxu1 %v2300_v3  ;;  %v466_v58 = vld [vmem:[%s3320_s1 + $0x48] sm:$0xff]  ;;  %v2172_v59 = vpack.c.bf16 %v467_v54, %v458_v53  ;;  %v476_v62 = vld [vmem:[%s3320_s1 + $0x98] sm:$0xff]  ;;  %v2168_v1 = vpack.c.bf16 %v66_v61, %v57_v60  ;;  %v475_v2 = vld [vmem:[%s3320_s1 + $0x90] sm:$0xff] }
  0x10   :  { %2153 = vmatprep.subr.bf16.mxu0 %v2152_v43  ;;  %2161 = vmatprep.subr.bf16.mxu1 %v2160_v47  ;;  %v2174_v0 = vpack.c.bf16 %v466_v58, %v457_v57  ;;  %v484_v4 = vld [vmem:[%s3320_s1 + $0xd8] sm:$0xff]  ;;  %v2176_v5 = vpack.c.bf16 %v485_v63, %v476_v62  ;;  %v469_v7 = vld [vmem:[%s3320_s1 + $0x60] sm:$0xff]  ;;  %v462_v8 = vld [vmem:[%s3320_s1 + $0x28] sm:$0xff] }
  0x11   :  { %2025 = vmatmul.mubr.msk.f32.gmra.mrb[2].mxu0 %vm67_vm0, %v2463_v51  ;;  %2027 = vmatmul.mubr.msk.f32.gmra.mrb[2].mxu1 %vm67_vm0, %v2463_v51  ;;  %v460_v6 = vld [vmem:[%s3320_s1 + $0x18] sm:$0xff]  ;;  %v471_v9 = vld [vmem:[%s3320_s1 + $0x70] sm:$0xff]  ;;  %v2178_v10 = vpack.c.bf16 %v484_v4, %v475_v2  ;;  %v461_v14 = vld [vmem:[%s3320_s1 + $0x20] sm:$0xff] }
  0x12   :  { %2155 = vmatpush1.bf16.msra.mxu0 %v2154_v52  ;;  %2163 = vmatpush1.bf16.msra.mxu1 %v2162_v55  ;;  %v459_v11 = vld [vmem:[%s3320_s1 + $0x10] sm:$0xff]  ;;  %v468_v12 = vld [vmem:[%s3320_s1 + $0x58] sm:$0xff]  ;;  %v2180_v13 = vpack.c.bf16 %v469_v7, %v460_v6  ;;  %v470_v15 = vld [vmem:[%s3320_s1 + $0x68] sm:$0xff]  ;;  %v2188_v17 = vpack.c.bf16 %v471_v9, %v462_v8 }
  0x13   :  { %292 = vmatprep.mubr.f32.mxu0 %v2300_v3  ;;  %369 = vmatprep.mubr.f32.mxu1 %v2300_v3  ;;  %v478_v16 = vld [vmem:[%s3320_s1 + $0xa8] sm:$0xff]  ;;  %v487_v18 = vld [vmem:[%s3320_s1 + $0xf0] sm:$0xff]  ;;  %v480_v19 = vld [vmem:[%s3320_s1 + $0xb8] sm:$0xff]  ;;  %v2182_v21 = vpack.c.bf16 %v468_v12, %v459_v11  ;;  %v2190_v22 = vpack.c.bf16 %v470_v15, %v461_v14 }
  0x14   :  { %2165 = vmatprep.subr.bf16.mxu0 %v2164_v56  ;;  %2173 = vmatprep.subr.bf16.mxu1 %v2172_v59  ;;  %v489_v20 = vld [vmem:[%s3320_s1 + $0x100] sm:$0xff]  ;;  %v486_v24 = vld [vmem:[%s3320_s1 + $0xe8] sm:$0xff]  ;;  %v2184_v25 = vpack.c.bf16 %v487_v18, %v478_v16  ;;  %v479_v27 = vld [vmem:[%s3320_s1 + $0xb0] sm:$0xff] }
  0x15   :  { %2028 = vmatmul.mubr.msk.f32.vlgmr.msra.gmra.mrb[4].mxu0 %vm67_vm0, %v2421_v35  ;;  %2030 = vmatmul.mubr.msk.f32.vlgmr.msra.gmra.mrb[4].mxu1 %vm67_vm0, %v2421_v35  ;;  %v477_v23 = vld [vmem:[%s3320_s1 + $0xa0] sm:$0xff]  ;;  %v2192_v26 = vpack.c.bf16 %v489_v20, %v480_v19  ;;  %v488_v28 = vld [vmem:[%s3320_s1 + $0xf8] sm:$0xff]  ;;  %v474_v32 = vld [vmem:[%s3320_s1 + $0x88] sm:$0xff] }
  0x16   :  { %2167 = vmatpush3.bf16.msra.mxu0 %v2164_v56  ;;  %2175 = vmatpush1.bf16.msra.mxu1 %v2174_v0  ;;  %v464_v29 = vld [vmem:[%s3320_s1 + $0x38] sm:$0xff]  ;;  %v473_v30 = vld [vmem:[%s3320_s1 + $0x80] sm:$0xff]  ;;  %v2186_v33 = vpack.c.bf16 %v486_v24, %v477_v23  ;;  %v2194_v34 = vpack.c.bf16 %v488_v28, %v479_v27  ;;  %v463_v36 = vld [vmem:[%s3320_s1 + $0x30] sm:$0xff] }
  0x17   :  { %298 = vmatprep.mubr.f32.mxu0 %v2300_v3  ;;  %375 = vmatprep.mubr.f32.mxu1 %v2300_v3  ;;  %v465_v31 = vld [vmem:[%s3320_s1 + $0x40] sm:$0xff]  ;;  %v472_v37 = vld [vmem:[%s3320_s1 + $0x78] sm:$0xff]  ;;  %v2196_v38 = vpack.c.bf16 %v473_v30, %v464_v29  ;;  %v482_v40 = vld [vmem:[%s3320_s1 + $0xc8] sm:$0xff] }
  0x18   :  { %2169 = vmatprep.subr.bf16.mxu0 %v2168_v1  ;;  %2177 = vmatprep.subr.bf16.mxu1 %v2176_v5  ;;  %v2204_v39 = vpack.c.bf16 %v474_v32, %v465_v31  ;;  %v491_v41 = vld [vmem:[%s3320_s1 + $0x110] sm:$0xff]  ;;  %v2198_v42 = vpack.c.bf16 %v472_v37, %v463_v36  ;;  %v492_v44 = vld [vmem:[%s3320_s1 + $0x118] sm:$0xff]  ;;  %v481_v45 = vld [vmem:[%s3320_s1 + $0xc0] sm:$0xff] }
  0x19   :  { %2029 = vmatmul.mubr.msk.f32.gmra.mrb[6].mxu0 %vm67_vm0, %v2463_v51  ;;  %2031 = vmatmul.mubr.msk.f32.gmra.mrb[6].mxu1 %vm67_vm0, %v2463_v51  ;;  %v483_v43 = vld [vmem:[%s3320_s1 + $0xd0] sm:$0xff]  ;;  %v490_v46 = vld [vmem:[%s3320_s1 + $0x108] sm:$0xff]  ;;  %v2200_v47 = vpack.c.bf16 %v491_v41, %v482_v40  ;;  %v897_v53 = vld [vmem:[%s3321_s2 + $0x18] sm:$0xff] }
  0x1a   :  { %2171 = vmatpush3.bf16.msra.mxu0 %v2168_v1  ;;  %2179 = vmatpush1.bf16.msra.mxu1 %v2178_v10  ;;  %v2208_v48 = vpack.c.bf16 %v492_v44, %v483_v43  ;;  %v895_v49 = vld [vmem:[%s3321_s2 + $0x8] sm:$0xff]  ;;  %v904_v50 = vld [vmem:[%s3321_s2 + $0x50] sm:$0xff]  ;;  %v2202_v52 = vpack.c.bf16 %v490_v46, %v481_v45  ;;  %v906_v54 = vld [vmem:[%s3321_s2 + $0x60] sm:$0xff] }
  0x1b   :  { %2096 = vmatprep.mubr.msk.f32.mxu0 %vm67_vm0, %v2421_v35  ;;  %557 = vmatprep.mubr.f32.mxu1 %v2300_v3  ;;  %v894_v55 = vld [vmem:[%s3321_s2] sm:$0xff]  ;;  %v903_v56 = vld [vmem:[%s3321_s2 + $0x48] sm:$0xff]  ;;  %v2212_v57 = vpack.c.bf16 %v904_v50, %v895_v49  ;;  %v896_v58 = vld [vmem:[%s3321_s2 + $0x10] sm:$0xff]  ;;  %v2220_v61 = vpack.c.bf16 %v906_v54, %v897_v53 }
  0x1c   :  { %2181 = vmatprep.subr.bf16.mxu0 %v2180_v13  ;;  %2189 = vmatprep.subr.bf16.mxu1 %v2188_v17  ;;  %v905_v59 = vld [vmem:[%s3321_s2 + $0x58] sm:$0xff]  ;;  %v922_v62 = vld [vmem:[%s3321_s2 + $0xe0] sm:$0xff]  ;;  %v915_v63 = vld [vmem:[%s3321_s2 + $0xa8] sm:$0xff]  ;;  %v2214_v1 = vpack.c.bf16 %v903_v56, %v894_v55 }
  0x1d   :  { %2097 = vmatmul.mubr.msk.f32.vlgmr.msra.gmra.mrb[8].mxu0 %vm67_vm0, %v2463_v51  ;;  %2034 = vmatmul.mubr.msk.f32.vlgmr.msra.gmra.mrb[8].mxu1 %vm67_vm0, %v2421_v35  ;;  %v913_v60 = vld [vmem:[%s3321_s2 + $0x98] sm:$0xff]  ;;  %v924_v0 = vld [vmem:[%s3321_s2 + $0xf0] sm:$0xff]  ;;  %v2222_v2 = vpack.c.bf16 %v905_v59, %v896_v58  ;;  %v914_v6 = vld [vmem:[%s3321_s2 + $0xa0] sm:$0xff] }
  0x1e   :  { %2183 = vmatpush1.bf16.msra.mxu0 %v2182_v21  ;;  %2191 = vmatpush1.bf16.msra.mxu1 %v2190_v22  ;;  %v912_v4 = vld [vmem:[%s3321_s2 + $0x90] sm:$0xff]  ;;  %v921_v5 = vld [vmem:[%s3321_s2 + $0xd8] sm:$0xff]  ;;  %v2216_v7 = vpack.c.bf16 %v922_v62, %v913_v60  ;;  %v2224_v8 = vpack.c.bf16 %v924_v0, %v915_v63  ;;  %v923_v9 = vld [vmem:[%s3321_s2 + $0xe8] sm:$0xff] }
  0x1f   :  { %563 = vmatprep.mubr.f32.mxu1 %v2300_v3  ;;  %2185 = vmatprep.subr.bf16.mxu0 %v2184_v25  ;;  %v899_v10 = vld [vmem:[%s3321_s2 + $0x28] sm:$0xff]  ;;  %v908_v11 = vld [vmem:[%s3321_s2 + $0x70] sm:$0xff]  ;;  %v901_v12 = vld [vmem:[%s3321_s2 + $0x38] sm:$0xff]  ;;  %v2218_v14 = vpack.c.bf16 %v921_v5, %v912_v4  ;;  %v2226_v15 = vpack.c.bf16 %v923_v9, %v914_v6 }
  0x20   :  { %2193 = vmatprep.subr.bf16.mxu1 %v2192_v26  ;;  %634 = vmatprep.mubr.f32.mxu0 %v2300_v3  ;;  %v910_v13 = vld [vmem:[%s3321_s2 + $0x80] sm:$0xff]  ;;  %v2228_v16 = vpack.c.bf16 %v908_v11, %v899_v10  ;;  %v907_v18 = vld [vmem:[%s3321_s2 + $0x68] sm:$0xff]  ;;  %v900_v20 = vld [vmem:[%s3321_s2 + $0x30] sm:$0xff] }
  0x21   :  { %2035 = vmatmul.mubr.msk.f32.gmra.mrb[10].mxu1 %vm67_vm0, %v2463_v51  ;;  %v898_v17 = vld [vmem:[%s3321_s2 + $0x20] sm:$0xff]  ;;  %v2236_v19 = vpack.c.bf16 %v910_v13, %v901_v12  ;;  %v909_v21 = vld [vmem:[%s3321_s2 + $0x78] sm:$0xff]  ;;  %v919_v25 = vld [vmem:[%s3321_s2 + $0xc8] sm:$0xff] }
  0x22   :  { %2187 = vmatpush1.bf16.msra.mxu0 %v2186_v33  ;;  %2195 = vmatpush1.bf16.msra.mxu1 %v2194_v34  ;;  %v917_v22 = vld [vmem:[%s3321_s2 + $0xb8] sm:$0xff]  ;;  %v926_v23 = vld [vmem:[%s3321_s2 + $0x100] sm:$0xff]  ;;  %v2230_v24 = vpack.c.bf16 %v907_v18, %v898_v17  ;;  %v928_v26 = vld [vmem:[%s3321_s2 + $0x110] sm:$0xff]  ;;  %v2238_v28 = vpack.c.bf16 %v909_v21, %v900_v20 }
  0x23   :  { %711 = vmatprep.mubr.f32.mxu1 %v2300_v3  ;;  %2197 = vmatprep.subr.bf16.mxu0 %v2196_v38  ;;  %v1769_v27 = vld [vmem:[%s3322_s5 + $0x8] sm:$0x3]  ;;  %v916_v29 = vld [vmem:[%s3321_s2 + $0xb0] sm:$0xff]  ;;  %v925_v30 = vld [vmem:[%s3321_s2 + $0xf8] sm:$0xff]  ;;  %v2232_v31 = vpack.c.bf16 %v926_v23, %v917_v22  ;;  %v2240_v34 = vpack.c.bf16 %v928_v26, %v919_v25 }
  0x24   :  { %2205 = vmatprep.subr.bf16.mxu1 %v2204_v39  ;;  %v918_v32 = vld [vmem:[%s3321_s2 + $0xc0] sm:$0xff]  ;;  %v927_v33 = vld [vmem:[%s3321_s2 + $0x108] sm:$0xff]  ;;  %1777 = vperm.xlu0 %2294, %v1769_v27   ;;  %v2234_v38 = vpack.c.bf16 %v925_v30, %v916_v29  ;;  %v1323_v40 = vld [vmem:[%s3323_s3 + $0x50] sm:$0xff] }
  0x25   :  { %2036 = vmatmul.mubr.msk.f32.vlgmr.msra.gmra.mrb[10].mxu0 %vm67_vm0, %v2421_v35  ;;  %2038 = vmatmul.mubr.msk.f32.vlgmr.msra.gmra.mrb[12].mxu1 %vm67_vm0, %v2421_v35  ;;  %v902_v36 = vld [vmem:[%s3321_s2 + $0x40] sm:$0xff]  ;;  %v911_v37 = vld [vmem:[%s3321_s2 + $0x88] sm:$0xff]  ;;  %v2242_v41 = vpack.c.bf16 %v927_v33, %v918_v32  ;;  %v920_v46 = vld [vmem:[%s3321_s2 + $0xd0] sm:$0xff] }
  0x26   :  { %2199 = vmatpush1.bf16.msra.mxu0 %v2198_v42  ;;  %2207 = vmatpush3.bf16.msra.mxu1 %v2204_v39  ;;  %v1314_v39 = vld [vmem:[%s3323_s3 + $0x8] sm:$0xff]  ;;  %v2244_v42 = vpack.c.bf16 %v911_v37, %v902_v36  ;;  %v1313_v43 = vld [vmem:[%s3323_s3] sm:$0xff]  ;;  %v1331_v53 = vld [vmem:[%s3323_s3 + $0x90] sm:$0xff] }
  0x27   :  { %640 = vmatprep.mubr.f32.mxu0 %v2300_v3  ;;  %717 = vmatprep.mubr.f32.mxu1 %v2300_v3  ;;  %v1322_v44 = vld [vmem:[%s3323_s3 + $0x48] sm:$0xff]  ;;  %v2252_v45 = vpack.c.bf16 %v1323_v40, %v1314_v39  ;;  %v1341_v49 = vld [vmem:[%s3323_s3 + $0xe0] sm:$0xff]  ;;  %v1340_v54 = vld [vmem:[%s3323_s3 + $0xd8] sm:$0xff] }
  0x28   :  { %2201 = vmatprep.subr.bf16.mxu0 %v2200_v47  ;;  %2209 = vmatprep.subr.bf16.mxu1 %v2208_v48  ;;  %v929_v47 = vld [vmem:[%s3321_s2 + $0x118] sm:$0xff]  ;;  %v2254_v50 = vpack.c.bf16 %v1322_v44, %v1313_v43  ;;  %v1318_v58 = vld [vmem:[%s3323_s3 + $0x28] sm:$0xff]  ;;  %v1327_v59 = vld [vmem:[%s3323_s3 + $0x70] sm:$0xff]  ;;  %v2258_v60 = vpack.c.bf16 %v1340_v54, %v1331_v53 }
  0x29   :  { %2037 = vmatmul.mubr.msk.f32.gmra.mrb[12].mxu0 %vm67_vm0, %v2463_v51  ;;  %2039 = vmatmul.mubr.msk.f32.gmra.mrb[14].mxu1 %vm67_vm0, %v2463_v51  ;;  %v1316_v56 = vld [vmem:[%s3323_s3 + $0x18] sm:$0xff]  ;;  %v1317_v0 = vld [vmem:[%s3323_s3 + $0x20] sm:$0xff]  ;;  %v2268_v4 = vpack.c.bf16 %v1327_v59, %v1318_v58  ;;  %v1343_v5 = vld [vmem:[%s3323_s3 + $0xf0] sm:$0xff] }
  0x2a   :  { %2203 = vmatpush1.bf16.msra.mxu0 %v2202_v52  ;;  %2211 = vmatpush3.bf16.msra.mxu1 %v2208_v48  ;;  %v1332_v48 = vld [vmem:[%s3323_s3 + $0x98] sm:$0xff]  ;;  %v2248_v52 = vpack.c.bf16 %v929_v47, %v920_v46  ;;  %v1333_v10 = vld [vmem:[%s3323_s3 + $0xa0] sm:$0xff]  ;;  %v1342_v11 = vld [vmem:[%s3323_s3 + $0xe8] sm:$0xff] }
  0x2b   :  { %788 = vmatprep.mubr.f32.mxu0 %v2300_v3  ;;  %2107 = vmatprep.mubr.msk.f32.mxu1 %vm67_vm0, %v2421_v35  ;;  %v2256_v55 = vpack.c.bf16 %v1341_v49, %v1332_v48  ;;  %v1324_v62 = vld [vmem:[%s3323_s3 + $0x58] sm:$0xff]  ;;  %v1329_v17 = vld [vmem:[%s3323_s3 + $0x80] sm:$0xff]  ;;  %v2266_v20 = vpack.c.bf16 %v1342_v11, %v1333_v10  ;;  %v1319_v23 = vld [vmem:[%s3323_s3 + $0x30] sm:$0xff] }
  0x2c   :  { %2213 = vmatprep.subr.bf16.mxu0 %v2212_v57  ;;  %2221 = vmatprep.subr.bf16.mxu1 %v2220_v61  ;;  %v1325_v57 = vld [vmem:[%s3323_s3 + $0x60] sm:$0xff]  ;;  %v1315_v61 = vld [vmem:[%s3323_s3 + $0x10] sm:$0xff]  ;;  %v1336_v6 = vld [vmem:[%s3323_s3 + $0xb8] sm:$0xff] }
  0x2d   :  { %2040 = vmatmul.mubr.msk.f32.vlgmr.msra.gmra.mrb[14].mxu0 %vm67_vm0, %v2421_v35  ;;  %2108 = vmatmul.mubr.msk.f32.vlgmr.msra.gmra.mrb[16].mxu1 %vm67_vm0, %v2463_v51  ;;  %v2260_v63 = vpack.c.bf16 %v1325_v57, %v1316_v56  ;;  %v1321_v18 = vld [vmem:[%s3323_s3 + $0x40] sm:$0xff]  ;;  %v1338_v27 = vld [vmem:[%s3323_s3 + $0xc8] sm:$0xff]  ;;  %v1339_v30 = vld [vmem:[%s3323_s3 + $0xd0] sm:$0xff] }
  0x2e   :  { %2215 = vmatpush1.bf16.msra.mxu0 %v2214_v1  ;;  %2223 = vmatpush1.bf16.msra.mxu1 %v2222_v2  ;;  %v1326_v1 = vld [vmem:[%s3323_s3 + $0x68] sm:$0xff]  ;;  %v1768_v21 = vld [vmem:[%s3322_s5] sm:$0xff] }
  0x2f   :  { %794 = vmatprep.mubr.f32.mxu0 %v2300_v3  ;;  %2217 = vmatprep.subr.bf16.mxu0 %v2216_v7  ;;  %v1334_v2 = vld [vmem:[%s3323_s3 + $0xa8] sm:$0xff]  ;;  %v1345_v7 = vld [vmem:[%s3323_s3 + $0x100] sm:$0xff]  ;;  %v2270_v9 = vpack.c.bf16 %v1326_v1, %v1317_v0 }
  0x30   :  { %2225 = vmatprep.subr.bf16.mxu1 %v2224_v8  ;;  %1071 = vmatprep.mubr.f32.mxu1 %v2300_v3  ;;  %v2262_v8 = vpack.c.bf16 %v1324_v62, %v1315_v61  ;;  %v2264_v12 = vpack.c.bf16 %v1343_v5, %v1334_v2  ;;  %v2272_v13 = vpack.c.bf16 %v1345_v7, %v1336_v6  ;;  %v1337_v32 = vld [vmem:[%s3323_s3 + $0xc0] sm:$0xff]  ;;  %v1346_v33 = vld [vmem:[%s3323_s3 + $0x108] sm:$0xff] }
  0x31   :  { %2041 = vmatmul.mubr.msk.f32.gmra.mrb[16].mxu0 %vm67_vm0, %v2463_v51  ;;  %1772 = vperm.xlu0 %2294, %v1768_v21   ;;  %v2282_v37 = vpack.c.bf16 %v1346_v33, %v1337_v32 }
  0x32   :  { %2219 = vmatpush1.bf16.msra.mxu0 %v2218_v14  ;;  %994 = vmatprep.mubr.f32.mxu0 %v2300_v3  ;;  %v1335_v14 = vld [vmem:[%s3323_s3 + $0xb0] sm:$0xff] }
  0x33   :  { %2227 = vmatpush1.bf16.msra.mxu1 %v2226_v15  ;;  %2229 = vmatprep.subr.bf16.mxu0 %v2228_v16  ;;  %v1344_v15 = vld [vmem:[%s3323_s3 + $0xf8] sm:$0xff] }
  0x34   :  { %2237 = vmatprep.subr.bf16.mxu1 %v2236_v19  ;;  %v1320_v16 = vld [vmem:[%s3323_s3 + $0x38] sm:$0xff]  ;;  %v1330_v19 = vld [vmem:[%s3323_s3 + $0x88] sm:$0xff]  ;;  %v2274_v22 = vpack.c.bf16 %v1344_v15, %v1335_v14 }
  0x35   :  { %2044 = vmatmul.mubr.msk.f32.vlgmr.msra.gmra.mrb[18].mxu0 %vm67_vm0, %v2421_v35  ;;  %v2276_v25 = vpack.c.bf16 %v1329_v17, %v1320_v16  ;;  %v2284_v26 = vpack.c.bf16 %v1330_v19, %v1321_v18 }
  0x36   :  { %2046 = vmatmul.mubr.msk.f32.vlgmr.msra.gmra.mrb[18].mxu1 %vm67_vm0, %v2421_v35  ;;  %2231 = vmatpush1.bf16.msra.mxu0 %v2230_v24  ;;  %v1328_v24 = vld [vmem:[%s3323_s3 + $0x78] sm:$0xff] }
  0x37   :  { %2239 = vmatpush1.bf16.msra.mxu1 %v2238_v28  ;;  %1000 = vmatprep.mubr.f32.mxu0 %v2300_v3  ;;  %v1347_v28 = vld [vmem:[%s3323_s3 + $0x110] sm:$0xff]  ;;  %v2278_v29 = vpack.c.bf16 %v1328_v24, %v1319_v23 }
  0x38   :  { %1077 = vmatprep.mubr.f32.mxu1 %v2300_v3  ;;  %2233 = vmatprep.subr.bf16.mxu0 %v2232_v31  ;;  %v1348_v31 = vld [vmem:[%s3323_s3 + $0x118] sm:$0xff] }
  0x39   :  { %2045 = vmatmul.mubr.msk.f32.gmra.mrb[20].mxu0 %vm67_vm0, %v2463_v51  ;;  %2241 = vmatprep.subr.bf16.mxu1 %v2240_v34  ;;  %v2280_v34 = vpack.c.bf16 %v1347_v28, %v1338_v27  ;;  %v2288_v36 = vpack.c.bf16 %v1348_v31, %v1339_v30 }
  0x3a   :  { %2047 = vmatmul.mubr.msk.f32.gmra.mrb[20].mxu1 %vm67_vm0, %v2463_v51  ;;  %2235 = vmatpush1.bf16.msra.mxu0 %v2234_v38 }
  0x3b   :  { %2243 = vmatpush1.bf16.msra.mxu1 %v2242_v41  ;;  %1148 = vmatprep.mubr.f32.mxu0 %v2300_v3 }
  0x3c   :  { %1225 = vmatprep.mubr.f32.mxu1 %v2300_v3  ;;  %2245 = vmatprep.subr.bf16.mxu0 %v2244_v42 }
  0x3d   :  { %2048 = vmatmul.mubr.msk.f32.vlgmr.msra.gmra.mrb[22].mxu0 %vm67_vm0, %v2421_v35  ;;  %2253 = vmatprep.subr.bf16.mxu1 %v2252_v45 }
  0x3e   :  { %2050 = vmatmul.mubr.msk.f32.vlgmr.msra.gmra.mrb[22].mxu1 %vm67_vm0, %v2421_v35  ;;  %2247 = vmatpush3.bf16.msra.mxu0 %v2244_v42 }
  0x3f   :  { %2255 = vmatpush1.bf16.msra.mxu1 %v2254_v50  ;;  %1154 = vmatprep.mubr.f32.mxu0 %v2300_v3 }
  0x40   :  { %1231 = vmatprep.mubr.f32.mxu1 %v2300_v3  ;;  %2249 = vmatprep.subr.bf16.mxu0 %v2248_v52 }
  0x41   :  { %2049 = vmatmul.mubr.msk.f32.gmra.mrb[24].mxu0 %vm67_vm0, %v2463_v51  ;;  %2257 = vmatprep.subr.bf16.mxu1 %v2256_v55 }
  0x42   :  { %2051 = vmatmul.mubr.msk.f32.gmra.mrb[24].mxu1 %vm67_vm0, %v2463_v51  ;;  %2251 = vmatpush3.bf16.msra.mxu0 %v2248_v52 }
  0x43   :  { %2259 = vmatpush1.bf16.msra.mxu1 %v2258_v60  ;;  %2118 = vmatprep.mubr.msk.f32.mxu0 %vm67_vm0, %v2421_v35 }
  0x44   :  { %1413 = vmatprep.mubr.f32.mxu1 %v2300_v3  ;;  %2261 = vmatprep.subr.bf16.mxu0 %v2260_v63 }
  0x45   :  { %2119 = vmatmul.mubr.msk.f32.vlgmr.msra.gmra.mrb[26].mxu0 %vm67_vm0, %v2463_v51  ;;  %2269 = vmatprep.subr.bf16.mxu1 %v2268_v4 }
  0x46   :  { %2054 = vmatmul.mubr.msk.f32.vlgmr.msra.gmra.mrb[26].mxu1 %vm67_vm0, %v2421_v35  ;;  %2263 = vmatpush1.bf16.msra.mxu0 %v2262_v8 }
  0x47   :  { %2271 = vmatpush1.bf16.msra.mxu1 %v2270_v9  ;;  %1419 = vmatprep.mubr.f32.mxu1 %v2300_v3 }
  0x48   :  { %2265 = vmatprep.subr.bf16.mxu0 %v2264_v12  ;;  %2273 = vmatprep.subr.bf16.mxu1 %v2272_v13 }
  0x49   :  { %1490 = vmatprep.mubr.f32.mxu0 %v2300_v3 }
  0x4a   :  { %2055 = vmatmul.mubr.msk.f32.gmra.mrb[28].mxu1 %vm67_vm0, %v2463_v51  ;;  %2267 = vmatpush1.bf16.msra.mxu0 %v2266_v20 }
  0x4b   :  { %2275 = vmatpush1.bf16.msra.mxu1 %v2274_v22  ;;  %1567 = vmatprep.mubr.f32.mxu1 %v2300_v3 }
  0x4c   :  { %2277 = vmatprep.subr.bf16.mxu0 %v2276_v25  ;;  %2285 = vmatprep.subr.bf16.mxu1 %v2284_v26 }
  0x4d   :  { %2056 = vmatmul.mubr.msk.f32.vlgmr.msra.gmra.mrb[28].mxu0 %vm67_vm0, %v2421_v35 }
  0x4e   :  { %2058 = vmatmul.mubr.msk.f32.vlgmr.msra.gmra.mrb[30].mxu1 %vm67_vm0, %v2421_v35  ;;  %2279 = vmatpush1.bf16.msra.mxu0 %v2278_v29 }
  0x4f   :  { %2287 = vmatpush3.bf16.msra.mxu1 %v2284_v26  ;;  %1496 = vmatprep.mubr.f32.mxu0 %v2300_v3 }
  0x50   :  { %1573 = vmatprep.mubr.f32.mxu1 %v2300_v3  ;;  %2281 = vmatprep.subr.bf16.mxu0 %v2280_v34 }
  0x51   :  { %2057 = vmatmul.mubr.msk.f32.gmra.mrb[30].mxu0 %vm67_vm0, %v2463_v51  ;;  %2289 = vmatprep.subr.bf16.mxu1 %v2288_v36 }
  0x52   :  { %2059 = vmatmul.mubr.msk.f32.gmra.mrb[32].mxu1 %vm67_vm0, %v2463_v51  ;;  %2283 = vmatpush1.bf16.msra.mxu0 %v2282_v37 }
  0x53   :  { %2291 = vmatpush3.bf16.msra.mxu1 %v2288_v36  ;;  %1644 = vmatprep.mubr.f32.mxu0 %v2300_v3 }
  0x54   :  { %2129 = vmatprep.mubr.msk.f32.mxu1 %vm67_vm0, %v2421_v35 }
  0x55   :  { %2060 = vmatmul.mubr.msk.f32.vlgmr.msra.gmra.mrb[32].mxu0 %vm67_vm0, %v2421_v35 }
  0x56   :  { %2130 = vmatmul.mubr.msk.f32.vlgmr.msra.gmra.mrb[34].mxu1 %vm67_vm0, %v2463_v51  ;;  %1650 = vmatprep.mubr.f32.mxu0 %v2300_v3 }
  0x59   :  { %2061 = vmatmul.mubr.msk.f32.gmra.mrb[34].mxu0 %vm67_vm0, %v2463_v51 }
  0xa3   :  { %v3025_v24 = vpop.permute.xlu0 %1777 }
  0xa4   :  { %3336 = vst [vmem:[#allocation6_spill] sm:$0xff] %v3025_v24 }
  0xb0   :  { %v3027_v4 = vpop.permute.xlu0 %1772 }
  0xe0   :  { %v2907_v38 = vpop.f32.mrb[0].mxu0  ;;  %v2911_v40 = vpop.f32.mrb[0].mxu1 }
  0xe1   :  { %v2909_v39 = vpop.f32.mrb[1].mxu0  ;;  %v2913_v41 = vpop.f32.mrb[1].mxu1 }
  0xe4   :  { %v2915_v42 = vpop.f32.mrb[2].mxu0  ;;  %v2919_v35 = vpop.f32.mrb[2].mxu1 }
  0xe5   :  { %v2917_v43 = vpop.f32.mrb[3].mxu0  ;;  %v2921_v44 = vpop.f32.mrb[3].mxu1 }
  0xe8   :  { %v2923_v3 = vpop.f32.mrb[4].mxu0  ;;  %v2927_v51 = vpop.f32.mrb[4].mxu1 }
  0xe9   :  { %v2925_v45 = vpop.f32.mrb[5].mxu0  ;;  %v2929_v46 = vpop.f32.mrb[5].mxu1 }
  0xec   :  { %v2931_v47 = vpop.f32.mrb[6].mxu0  ;;  %v2935_v49 = vpop.f32.mrb[6].mxu1 }
  0xed   :  { %v2933_v48 = vpop.f32.mrb[7].mxu0  ;;  %3332 = vst [vmem:[#allocation2_spill] sm:$0xff] %v2935_v49  ;;  %v2937_v50 = vpop.f32.mrb[7].mxu1 }
  0xee   :  { %3333 = vst [vmem:[#allocation3_spill] sm:$0xff] %v2937_v50 }
  0xf0   :  { %v2939_v52 = vpop.f32.mrb[8].mxu0  ;;  %v559_v53 = vpop.f32.mrb[8].mxu1 }
  0xf1   :  { %v2941_v54 = vpop.f32.mrb[9].mxu0  ;;  %v876_v55 = vmax.f32 %v2907_v38, %v559_v53  ;;  %v561_v56 = vpop.f32.mrb[9].mxu1 }
  0xf2   :  { %v877_v57 = vmax.f32 %v2909_v39, %v561_v56 }
  0xf4   :  { %v2945_v58 = vpop.f32.mrb[10].mxu1 }
  0xf5   :  { %v885_v59 = vmax.f32 %v2915_v42, %v2945_v58  ;;  %v2949_v60 = vpop.f32.mrb[11].mxu1 }
  0xf6   :  { %v886_v61 = vmax.f32 %v2917_v43, %v2949_v60 }
  0xf8   :  { %v2953_v62 = vpop.f32.mrb[10].mxu0  ;;  %v2957_v0 = vpop.f32.mrb[12].mxu1 }
  0xf9   :  { %v2959_v1 = vpop.f32.mrb[11].mxu0  ;;  %v2965_v5 = vpop.f32.mrb[13].mxu1 }
  0xfc   :  { %v2969_v7 = vpop.f32.mrb[12].mxu0  ;;  %v2973_v9 = vpop.f32.mrb[14].mxu1 }
  0xfd   :  { %v2975_v10 = vpop.f32.mrb[13].mxu0  ;;  %v2981_v13 = vpop.f32.mrb[15].mxu1 }
 0x100   :  { %v2985_v15 = vpop.f32.mrb[14].mxu0  ;;  %v2989_v17 = vpop.f32.mrb[16].mxu1 }
 0x101   :  { %v2991_v18 = vpop.f32.mrb[15].mxu0  ;;  %v2997_v21 = vpop.f32.mrb[17].mxu1 }
 0x104   :  { %v3001_v23 = vpop.f32.mrb[16].mxu0 }
 0x105   :  { %3334 = vst [vmem:[#allocation4_spill] sm:$0xff] %v3001_v23  ;;  %v3005_v25 = vpop.f32.mrb[17].mxu0 }
 0x106   :  { %3335 = vst [vmem:[#allocation5_spill] sm:$0xff] %v3005_v25 }
 0x108   :  { %v996_v27 = vpop.f32.mrb[18].mxu0 }
 0x109   :  { %v998_v28 = vpop.f32.mrb[19].mxu0  ;;  %v1073_v29 = vpop.f32.mrb[18].mxu1 }
 0x10a   :  { %v1075_v30 = vpop.f32.mrb[19].mxu1 }
 0x10c   :  { %v1002_v31 = vpop.f32.mrb[20].mxu0 }
 0x10d   :  { %v1004_v32 = vpop.f32.mrb[21].mxu0  ;;  %v1079_v33 = vpop.f32.mrb[20].mxu1 }
 0x10e   :  { %v3009_v34 = vpop.f32.mrb[21].mxu1 }
 0x110   :  { %v1150_v36 = vpop.f32.mrb[22].mxu0 }
 0x111   :  { %v1152_v37 = vpop.f32.mrb[23].mxu0  ;;  %v3011_v38 = vpop.f32.mrb[22].mxu1 }
 0x112   :  { %v3013_v39 = vpop.f32.mrb[23].mxu1 }
 0x114   :  { %v1156_v42 = vpop.f32.mrb[24].mxu0 }
 0x115   :  { %v3015_v43 = vpop.f32.mrb[25].mxu0  ;;  %v3017_v53 = vpop.f32.mrb[24].mxu1 }
 0x116   :  { %v3019_v56 = vpop.f32.mrb[25].mxu1 }
 0x118   :  { %v3021_v58 = vpop.f32.mrb[26].mxu0 }
 0x119   :  { %v1415_v60 = vpop.f32.mrb[26].mxu1  ;;  %v3023_v26 = vpop.f32.mrb[27].mxu0 }
 0x11a   :  { %v1732_v22 = vmax.f32 %v996_v27, %v1415_v60  ;;  %v1417_v20 = vpop.f32.mrb[27].mxu1 }
 0x11b   :  { %v1733_v19 = vmax.f32 %v998_v28, %v1417_v20  ;;  %v3341_v28 = vmax.f32 %v2919_v35, %v2969_v7 }
 0x11c   :  { %v1750_v16 = vmax.f32 %v876_v55, %v1732_v22  ;;  %v3337_v55 = vmax.f32 %v2911_v40, %v2953_v62 }
 0x11d   :  { %v1751_v14 = vmax.f32 %v877_v57, %v1733_v19  ;;  %v1421_v12 = vpop.f32.mrb[28].mxu1 }
 0x11e   :  { %v1741_v11 = vmax.f32 %v1002_v31, %v1421_v12  ;;  %v1423_v8 = vpop.f32.mrb[29].mxu1  ;;  %v1780_v12 = vadd.f32 %v3027_v4, %v1750_v16 }
 0x11f   :  { %v1742_v6 = vmax.f32 %v1004_v32, %v1423_v8  ;;  %v1781_v8 = vadd.f32 %v3027_v4, %v1751_v14 }
 0x120   :  { %v3029_v2 = vmax.f32 %v885_v59, %v1741_v11  ;;  %v1492_v63 = vpop.f32.mrb[28].mxu0  ;;  %v3338_v59 = vmax.f32 %v2923_v3, %v2957_v0  ;;  %v3045_v62 = vmax.f32 %v1780_v12, 0.0  ;;  %v3340_v3 = vmax.f32 %v2925_v45, %v2965_v5 }
 0x121   :  { %v3031_v25 = vmax.f32 %v886_v61, %v1742_v6  ;;  %v1734_v50 = vmax.f32 %v1073_v29, %v1492_v63  ;;  %v1569_v23 = vpop.f32.mrb[30].mxu1  ;;  %v1494_v49 = vpop.f32.mrb[29].mxu0  ;;  %v3339_v61 = vmax.f32 %v2913_v41, %v2959_v1  ;;  %v3047_v16 = vmax.f32 %v1781_v8, 0.0 }
 0x122   :  { %v1736_v24 = vmax.f32 %v1150_v36, %v1569_v23  ;;  %v1735_v27 = vmax.f32 %v1075_v30, %v1494_v49  ;;  %v1571_v60 = vpop.f32.mrb[31].mxu1  ;;  %v1849_v45 = vmul.f32 %v3045_v62, %v3045_v62 }
 0x123   :  { %v1752_v57 = vmax.f32 %v3337_v55, %v1734_v50  ;;  %v1737_v6 = vmax.f32 %v1152_v37, %v1571_v60  ;;  %v1816_v31 = vadd.f32 %v3047_v16, %v3045_v62  ;;  %v1850_v5 = vmul.f32 %v3047_v16, %v3047_v16 }
 0x124   :  { %v1754_v11 = vmax.f32 %v3338_v59, %v1736_v24  ;;  %v1753_v63 = vmax.f32 %v3339_v61, %v1735_v27  ;;  %v1498_v19 = vpop.f32.mrb[30].mxu0  ;;  %v3342_v27 = vmax.f32 %v2931_v47, %v2973_v9  ;;  %v3345_v47 = vmax.f32 %v2927_v51, %v2985_v15 }
 0x125   :  { %v1743_v49 = vmax.f32 %v1079_v33, %v1498_v19  ;;  %v1575_v20 = vpop.f32.mrb[32].mxu1  ;;  %v1500_v22 = vpop.f32.mrb[31].mxu0  ;;  %v1782_v40 = vadd.f32 %v3027_v4, %v1752_v57  ;;  %v1755_v0 = vmax.f32 %v3340_v3, %v1737_v6  ;;  %v1867_v51 = vadd.f32 %v1850_v5, %v1849_v45 }
 0x126   :  { %v1577_v50 = vpop.f32.mrb[33].mxu1  ;;  %v1783_v14 = vadd.f32 %v3027_v4, %v1753_v63  ;;  %v1745_v32 = vmax.f32 %v1156_v42, %v1575_v20  ;;  %v1744_v36 = vmax.f32 %v3009_v34, %v1500_v22  ;;  %v3343_v34 = vmax.f32 %v2921_v44, %v2975_v10 }
 0x127   :  { %v3053_v24 = vmax.f32 %v1782_v40, 0.0  ;;  %v3058_v29 = vmax.f32 %v3341_v28, %v1743_v49  ;;  %v1746_v37 = vmax.f32 %v3015_v43, %v1577_v50  ;;  %v3347_v44 = vmax.f32 %v2929_v46, %v2991_v18  ;;  %v3349_v40 = vld [vmem:[#allocation2_spill] sm:$0xff]  ;;  %v3350_v50 = vld [vmem:[#allocation4_spill] sm:$0xff] }
 0x128   :  { %v1646_v41 = vpop.f32.mrb[32].mxu0  ;;  %v3066_v33 = vmax.f32 %v1783_v14, 0.0  ;;  %v3074_v60 = vmax.f32 %v3342_v27, %v1745_v32  ;;  %v1762_v43 = vmax.f32 %v3343_v34, %v1744_v36  ;;  %v3351_v3 = vmax.f32 %v3349_v40, %v3350_v50 }
 0x129   :  { %v2131_v1 = vpop.f32.mrb[34].mxu1  ;;  %v1648_v23 = vpop.f32.mrb[33].mxu0  ;;  %v1738_v35 = vmax.f32 %v3011_v38, %v1646_v41  ;;  %v1817_v8 = vadd.f32 %v1816_v31, %v3053_v24  ;;  %v3344_v38 = vmax.f32 %v2933_v48, %v2981_v13  ;;  %v3348_v48 = vmax.f32 %v2941_v54, %v2997_v21  ;;  %v3353_v41 = vld [vmem:[#allocation5_spill] sm:$0xff] }
 0x12a   :  { %v1723_v30 = vpop.f32.mrb[35].mxu1  ;;  %v1749_v55 = vmax.f32 %v3021_v58, %v2131_v1  ;;  %v1739_v57 = vmax.f32 %v3013_v39, %v1648_v23  ;;  %v1784_v39 = vadd.f32 %v3027_v4, %v1754_v11  ;;  %v1851_v61 = vmul.f32 %v3053_v24, %v3053_v24 }
 0x12b   :  { %v1740_v42 = vmax.f32 %v3023_v26, %v1723_v30  ;;  %v3086_v59 = vmax.f32 %v3344_v38, %v1746_v37  ;;  %v1756_v9 = vmax.f32 %v3345_v47, %v1738_v35  ;;  %v3346_v26 = vmax.f32 %v2939_v52, %v2989_v17  ;;  %v1972_v47 = vld [vmem:[%s3325_s7] sm:$0xff] }
 0x12c   :  { %v1652_v7 = vpop.f32.mrb[34].mxu0  ;;  %v1757_v10 = vmax.f32 %v3347_v44, %v1739_v57  ;;  %v1818_v15 = vadd.f32 %v1817_v8, %v3066_v33  ;;  %v1785_v11 = vadd.f32 %v3027_v4, %v1755_v0  ;;  %v3108_v17 = vmax.f32 %v1784_v39, 0.0  ;;  %v3355_v8 = vld [vmem:[#allocation6_spill] sm:$0xff] }
 0x12d   :  { %v1654_v12 = vpop.f32.mrb[35].mxu0  ;;  %v3095_v58 = vmax.f32 %v3346_v26, %v1749_v55  ;;  %v1758_v13 = vmax.f32 %v3348_v48, %v1740_v42  ;;  %v1786_v52 = vadd.f32 %v3027_v4, %v1756_v9  ;;  %v1868_v46 = vadd.f32 %v1867_v51, %v1851_v61  ;;  %v1942_v42 = vld [vmem:[%s3324_s6] sm:$0xff] }
 0x12e   :  { %v1787_v63 = vadd.f32 %v3027_v4, %v1757_v10  ;;  %v1852_v18 = vmul.f32 %v3066_v33, %v3066_v33  ;;  %v1747_v54 = vmax.f32 %v3017_v53, %v1652_v7  ;;  %v3114_v21 = vmax.f32 %v1785_v11, 0.0  ;;  %v3352_v53 = vld [vmem:[#allocation3_spill] sm:$0xff] }
 0x12f   :  { %v3116_v6 = vmax.f32 %v1786_v52, 0.0  ;;  %v1748_v19 = vmax.f32 %v3019_v56, %v1654_v12  ;;  %v1819_v49 = vadd.f32 %v1818_v15, %v3108_v17  ;;  %v1853_v20 = vmul.f32 %v3108_v17, %v3108_v17  ;;  %v1943_v12 = vld [vmem:[%s3324_s6 + $0x8] sm:$0x3] }
 0x130   :  { %v3122_v22 = vmax.f32 %v1787_v63, 0.0  ;;  %v1765_v0 = vmax.f32 %v3351_v3, %v1747_v54  ;;  %v1788_v14 = vadd.f32 %v3027_v4, %v1758_v13  ;;  %v3354_v1 = vmax.f32 %v3352_v53, %v3353_v41 }
 0x131   :  { %v1820_v28 = vadd.f32 %v1819_v49, %v3114_v21  ;;  %v1869_v56 = vadd.f32 %v1868_v46, %v1852_v18  ;;  %v1854_v31 = vmul.f32 %v3114_v21, %v3114_v21  ;;  %v1855_v45 = vmul.f32 %v3116_v6, %v3116_v6 }
 0x132   :  { %v1766_v23 = vmax.f32 %v3354_v1, %v1748_v19  ;;  %v3137_v32 = vmax.f32 %v1788_v14, 0.0  ;;  %v1856_v36 = vmul.f32 %v3122_v22, %v3122_v22  ;;  %v1789_v34 = vadd.f32 %v3355_v8, %v3029_v2 }
 0x133   :  { %v1821_v30 = vadd.f32 %v1820_v28, %v3116_v6  ;;  %v1870_v5 = vadd.f32 %v1869_v56, %v1853_v20  ;;  %v1790_v38 = vadd.f32 %v3355_v8, %v3031_v25  ;;  %v1791_v9 = vadd.f32 %v3355_v8, %v3058_v29 }
 0x134   :  { %v1857_v27 = vmul.f32 %v3137_v32, %v3137_v32  ;;  %v3160_v39 = vmax.f32 %v1789_v34, 0.0  ;;  %v1792_v2 = vadd.f32 %v3355_v8, %v1762_v43  ;;  %v1793_v52 = vadd.f32 %v3355_v8, %v3074_v60 }
 0x135   :  { %v1822_v4 = vadd.f32 %v1821_v30, %v3122_v22  ;;  %v1871_v37 = vadd.f32 %v1870_v5, %v1854_v31  ;;  %v3162_v26 = vmax.f32 %v1790_v38, 0.0  ;;  %v3164_v44 = vmax.f32 %v1791_v9, 0.0 }
 0x136   :  { %v1827_v25 = vsel %vm1826_vm1, %v3160_v39, 0.0  ;;  %v1858_v10 = vmul.f32 %v3160_v39, %v3160_v39  ;;  %v3179_v51 = vmax.f32 %v1792_v2, 0.0  ;;  %v3190_v49 = vmax.f32 %v1793_v52, 0.0 }
 0x137   :  { %v1823_v35 = vadd.f32 %v1822_v4, %v3137_v32  ;;  %v1872_v7 = vadd.f32 %v1871_v37, %v1855_v45  ;;  %v1828_v48 = vsel %vm1826_vm1, %v3162_v26, 0.0  ;;  %v1859_v29 = vmul.f32 %v3162_v26, %v3162_v26 }
 0x138   :  { %v1830_v13 = vsel %vm1826_vm1, %v3164_v44, 0.0  ;;  %v1860_v61 = vmul.f32 %v3164_v44, %v3164_v44  ;;  %v1829_v43 = vadd.f32 %v1828_v48, %v1827_v25  ;;  %v1877_v15 = vsel %vm1826_vm1, %v1858_v10, 0.0  ;;  %v1973_v48 = vld [vmem:[%s3325_s7 + $0x8] sm:$0x3] }
 0x139   :  { %1824 = vadd.xlane.f32.xlu1 %v1823_v35  ;;  %v1873_v55 = vadd.f32 %v1872_v7, %v1856_v36  ;;  %v1878_v11 = vsel %vm1826_vm1, %v1859_v29, 0.0  ;;  %v1832_v18 = vsel %vm1826_vm1, %v3179_v51, 0.0  ;;  %v1861_v54 = vmul.f32 %v3179_v51, %v3179_v51 }
 0x13a   :  { %v1831_v63 = vadd.f32 %v1830_v13, %v1829_v43  ;;  %v1880_v46 = vsel %vm1826_vm1, %v1860_v61, 0.0  ;;  %v1879_v19 = vadd.f32 %v1878_v11, %v1877_v15  ;;  %v1794_v20 = vadd.f32 %v3355_v8, %v3086_v59 }
 0x13b   :  { %v1874_v57 = vadd.f32 %v1873_v55, %v1857_v27  ;;  %v1882_v3 = vsel %vm1826_vm1, %v1861_v54, 0.0  ;;  %v1795_v60 = vadd.f32 %v3355_v8, %v1765_v0  ;;  %v1834_v14 = vsel %vm1826_vm1, %v3190_v49, 0.0 }
 0x13c   :  { %v1881_v40 = vadd.f32 %v1880_v46, %v1879_v19  ;;  %v1833_v50 = vadd.f32 %v1832_v18, %v1831_v63  ;;  %v1862_v53 = vmul.f32 %v3190_v49, %v3190_v49  ;;  %v3200_v41 = vmax.f32 %v1794_v20, 0.0 }
 0x13d   :  { %1875 = vadd.xlane.f32.xlu0 %v1874_v57  ;;  %v3202_v56 = vmax.f32 %v1795_v60, 0.0  ;;  %v1796_v59 = vadd.f32 %v3355_v8, %v1766_v23  ;;  %v1797_v23 = vadd.f32 %v3355_v8, %v3095_v58 }
 0x13e   :  { %v1835_v1 = vadd.f32 %v1834_v14, %v1833_v50  ;;  %v1883_v28 = vadd.f32 %v1882_v3, %v1881_v40  ;;  %v1863_v30 = vmul.f32 %v3200_v41, %v3200_v41  ;;  %v1836_v0 = vsel %vm1826_vm1, %v3200_v41, 0.0 }
 0x13f   :  { %v1884_v31 = vsel %vm1826_vm1, %v1862_v53, 0.0  ;;  %v3210_v4 = vmax.f32 %v1796_v59, 0.0  ;;  %v1838_v36 = vsel %vm1826_vm1, %v3202_v56, 0.0  ;;  %v1864_v37 = vmul.f32 %v3202_v56, %v3202_v56 }
 0x140   :  { %v1837_v45 = vadd.f32 %v1836_v0, %v1835_v1  ;;  %v1885_v5 = vadd.f32 %v1884_v31, %v1883_v28  ;;  %v1886_v35 = vsel %vm1826_vm1, %v1863_v30, 0.0 }
 0x141   :  { %v1840_v55 = vsel %vm1826_vm1, %v3210_v4, 0.0  ;;  %v1865_v57 = vmul.f32 %v3210_v4, %v3210_v4 }
 0x142   :  { %v1839_v7 = vadd.f32 %v1838_v36, %v1837_v45  ;;  %v1887_v27 = vadd.f32 %v1886_v35, %v1885_v5 }
 0x144   :  { %v1841_v34 = vadd.f32 %v1840_v55, %v1839_v7 }
 0x14a   :  { %1946 = vperm.xlu1 %2295, %v1942_v42   ;;  %v1888_v42 = vsel %vm1826_vm1, %v1864_v37, 0.0 }
 0x14b   :  { %v1889_v38 = vadd.f32 %v1888_v42, %v1887_v27 }
 0x14e   :  { %1951 = vperm.xlu1 %2295, %v1943_v12   ;;  %v3224_v12 = vmax.f32 %v1797_v23, 0.0 }
 0x150   :  { %v1842_v58 = vsel %vm1826_vm1, %v3224_v12, 0.0  ;;  %v1866_v8 = vmul.f32 %v3224_v12, %v3224_v12 }
 0x151   :  { %v1843_v9 = vadd.f32 %v1842_v58, %v1841_v34 }
 0x152   :  { %1976 = vperm.xlu1 %2295, %v1972_v47   ;;  %v1890_v47 = vsel %vm1826_vm1, %v1865_v57, 0.0  ;;  %v1892_v25 = vsel %vm1826_vm1, %v1866_v8, 0.0 }
 0x153   :  { %v1891_v2 = vadd.f32 %v1890_v47, %v1889_v38 }
 0x155   :  { %v1893_v10 = vadd.f32 %v1892_v25, %v1891_v2 }
 0x176   :  { %1844 = vadd.xlane.f32.xlu1 %v1843_v9 }
 0x17a   :  { %1894 = vadd.xlane.f32.xlu1 %v1893_v10 }
 0x18b   :  { %1981 = vperm.xlu1 %2295, %v1973_v48  }
 0x1c6   :  { %v1825_v29 = vpop.xlane.xlu1 %1824 }
 0x1c7   :  { %v1847_v13 = vmul.f32 0.00086805556, %v1825_v29 }
 0x1c9   :  { %v1898_v61 = vmul.f32 %v1847_v13, %v1847_v13  ;;  %v1906_v46 = vsub.f32 %v3045_v62, %v1847_v13  ;;  %v1907_v54 = vsub.f32 %v3047_v16, %v1847_v13  ;;  %v1908_v19 = vsub.f32 %v3053_v24, %v1847_v13 }
 0x1ca   :  { %v1876_v43 = vpop.xlane.xlu0 %1875  ;;  %v1947_v63 = vpop.permute.xlu1 %1946  ;;  %v1909_v20 = vsub.f32 %v3066_v33, %v1847_v13  ;;  %v1910_v40 = vsub.f32 %v3108_v17, %v1847_v13  ;;  %v1911_v3 = vsub.f32 %v3114_v21, %v1847_v13  ;;  %v1912_v60 = vsub.f32 %v3116_v6, %v1847_v13 }
 0x1cb   :  { %v1896_v15 = vmul.f32 0.00086805556, %v1876_v43  ;;  %v1913_v14 = vsub.f32 %v3122_v22, %v1847_v13  ;;  %v1914_v53 = vsub.f32 %v3137_v32, %v1847_v13 }
 0x1cd   :  { %v1900_v11 = vsub.f32 %v1896_v15, %v1898_v61 }
 0x1ce   :  { %v3236_v18 = vpop.permute.xlu1 %1951 }
 0x1cf   :  { %v1902_v52 = vadd.f32 1e-05, %v1900_v11 }
 0x1d1   :  { %2296 = vrsqrt.f32 %v1902_v52 }
 0x1d2   :  { %v1977_v37 = vpop.permute.xlu1 %1976 }
 0x1db   :  { %v2297_v50 = vpop.eup %2296 }
 0x1dc   :  { %v1924_v62 = vmul.f32 %v2297_v50, %v1906_v46  ;;  %v1925_v1 = vmul.f32 %v2297_v50, %v1907_v54  ;;  %v1926_v28 = vmul.f32 %v2297_v50, %v1908_v19  ;;  %v1927_v59 = vmul.f32 %v2297_v50, %v1909_v20 }
 0x1dd   :  { %v1928_v16 = vmul.f32 %v2297_v50, %v1910_v40  ;;  %v1929_v30 = vmul.f32 %v2297_v50, %v1911_v3  ;;  %v1930_v24 = vmul.f32 %v2297_v50, %v1912_v60  ;;  %v1931_v0 = vmul.f32 %v2297_v50, %v1913_v14 }
 0x1de   :  { %v1932_v33 = vmul.f32 %v2297_v50, %v1914_v53  ;;  %v1954_v31 = vmul.f32 %v1947_v63, %v1924_v62  ;;  %v1955_v17 = vmul.f32 %v1947_v63, %v1925_v1  ;;  %v1956_v45 = vmul.f32 %v1947_v63, %v1926_v28 }
 0x1df   :  { %v1957_v5 = vmul.f32 %v1947_v63, %v1927_v59  ;;  %v1958_v21 = vmul.f32 %v1947_v63, %v1928_v16  ;;  %v1959_v36 = vmul.f32 %v1947_v63, %v1929_v30  ;;  %v1960_v6 = vmul.f32 %v1947_v63, %v1930_v24 }
 0x1e0   :  { %v1961_v22 = vmul.f32 %v1947_v63, %v1931_v0  ;;  %v1962_v23 = vmul.f32 %v1947_v63, %v1932_v33  ;;  %v1984_v32 = vadd.f32 %v1977_v37, %v1954_v31  ;;  %v1985_v35 = vadd.f32 %v1977_v37, %v1955_v17 }
 0x1e1   :  { %v1986_v7 = vadd.f32 %v1977_v37, %v1956_v45  ;;  %v1987_v27 = vadd.f32 %v1977_v37, %v1957_v5  ;;  %v1988_v55 = vadd.f32 %v1977_v37, %v1958_v21  ;;  %v1989_v57 = vadd.f32 %v1977_v37, %v1959_v36 }
 0x1e2   :  { %v1990_v42 = vadd.f32 %v1977_v37, %v1960_v6  ;;  %v1991_v34 = vadd.f32 %v1977_v37, %v1961_v22  ;;  %v1992_v38 = vadd.f32 %v1977_v37, %v1962_v23  ;;  %2002 = vst [vmem:[%s3326_s8] sm:$0xff] %v1984_v32  ;;  %2003 = vst [vmem:[%s3326_s8 + $0x8] sm:$0xff] %v1985_v35 }
 0x1e3   :  { %2004 = vst [vmem:[%s3326_s8 + $0x10] sm:$0xff] %v1986_v7  ;;  %2005 = vst [vmem:[%s3326_s8 + $0x18] sm:$0xff] %v1987_v27 }
 0x1e4   :  { %2006 = vst [vmem:[%s3326_s8 + $0x20] sm:$0xff] %v1988_v55  ;;  %2007 = vst [vmem:[%s3326_s8 + $0x28] sm:$0xff] %v1989_v57 }
 0x1e5   :  { %2008 = vst [vmem:[%s3326_s8 + $0x30] sm:$0xff] %v1990_v42  ;;  %2009 = vst [vmem:[%s3326_s8 + $0x38] sm:$0xff] %v1991_v34 }
 0x1e6   :  { %2010 = vst [vmem:[%s3326_s8 + $0x40] sm:$0xff] %v1992_v38 }
 0x203   :  { %v1845_v47 = vpop.xlane.xlu1 %1844 }
 0x204   :  { %v1848_v58 = vmul.f32 0.00086805556, %v1845_v47 }
 0x206   :  { %v1899_v9 = vmul.f32 %v1848_v58, %v1848_v58  ;;  %v1915_v48 = vsub.f32 %v3160_v39, %v1848_v58  ;;  %v1916_v29 = vsub.f32 %v3162_v26, %v1848_v58  ;;  %v1917_v13 = vsub.f32 %v3164_v44, %v1848_v58 }
 0x207   :  { %v1895_v8 = vpop.xlane.xlu1 %1894  ;;  %v1918_v61 = vsub.f32 %v3179_v51, %v1848_v58  ;;  %v1919_v43 = vsub.f32 %v3190_v49, %v1848_v58  ;;  %v1920_v11 = vsub.f32 %v3200_v41, %v1848_v58  ;;  %v1921_v52 = vsub.f32 %v3202_v56, %v1848_v58 }
 0x208   :  { %v1897_v2 = vmul.f32 0.00086805556, %v1895_v8  ;;  %v1922_v63 = vsub.f32 %v3210_v4, %v1848_v58  ;;  %v1923_v46 = vsub.f32 %v3224_v12, %v1848_v58 }
 0x20a   :  { %v1901_v25 = vsub.f32 %v1897_v2, %v1899_v9 }
 0x20b   :  { %v1982_v14 = vpop.permute.xlu1 %1981 }
 0x20c   :  { %v1903_v10 = vadd.f32 1e-05, %v1901_v25 }
 0x20e   :  { %2298 = vrsqrt.f32 %v1903_v10 }
 0x218   :  { %v2299_v15 = vpop.eup %2298 }
 0x219   :  { %v1933_v54 = vmul.f32 %v2299_v15, %v1915_v48  ;;  %v1934_v19 = vmul.f32 %v2299_v15, %v1916_v29  ;;  %v1935_v39 = vmul.f32 %v2299_v15, %v1917_v13  ;;  %v1936_v20 = vmul.f32 %v2299_v15, %v1918_v61 }
 0x21a   :  { %v1937_v26 = vmul.f32 %v2299_v15, %v1919_v43  ;;  %v1938_v40 = vmul.f32 %v2299_v15, %v1920_v11  ;;  %v1939_v44 = vmul.f32 %v2299_v15, %v1921_v52  ;;  %v1940_v50 = vmul.f32 %v2299_v15, %v1922_v63 }
 0x21b   :  { %v1941_v51 = vmul.f32 %v2299_v15, %v1923_v46  ;;  %v1963_v49 = vmul.f32 %v3236_v18, %v1933_v54  ;;  %v1964_v3 = vmul.f32 %v3236_v18, %v1934_v19  ;;  %v1965_v41 = vmul.f32 %v3236_v18, %v1935_v39 }
 0x21c   :  { %v1966_v56 = vmul.f32 %v3236_v18, %v1936_v20  ;;  %v1967_v4 = vmul.f32 %v3236_v18, %v1937_v26  ;;  %v1968_v12 = vmul.f32 %v3236_v18, %v1938_v40  ;;  %v1969_v60 = vmul.f32 %v3236_v18, %v1939_v44 }
 0x21d   :  { %v1970_v53 = vmul.f32 %v3236_v18, %v1940_v50  ;;  %v1971_v62 = vmul.f32 %v3236_v18, %v1941_v51  ;;  %v1993_v1 = vadd.f32 %v1982_v14, %v1963_v49  ;;  %v1994_v28 = vadd.f32 %v1982_v14, %v1964_v3 }
 0x21e   :  { %v1995_v59 = vadd.f32 %v1982_v14, %v1965_v41  ;;  %v1996_v16 = vadd.f32 %v1982_v14, %v1966_v56  ;;  %v1997_v30 = vadd.f32 %v1982_v14, %v1967_v4  ;;  %v1998_v24 = vadd.f32 %v1982_v14, %v1968_v12 }
 0x21f   :  { %v1999_v0 = vadd.f32 %v1982_v14, %v1969_v60  ;;  %v2000_v33 = vadd.f32 %v1982_v14, %v1970_v53  ;;  %v2001_v31 = vadd.f32 %v1982_v14, %v1971_v62  ;;  %2011 = vst [vmem:[%s3326_s8 + $0x48] sm:$0x3] %v1993_v1  ;;  %2012 = vst [vmem:[%s3326_s8 + $0x50] sm:$0x3] %v1994_v28 }
 0x220   :  { %2013 = vst [vmem:[%s3326_s8 + $0x58] sm:$0x3] %v1995_v59  ;;  %2014 = vst [vmem:[%s3326_s8 + $0x60] sm:$0x3] %v1996_v16 }
 0x221   :  { %2015 = vst [vmem:[%s3326_s8 + $0x68] sm:$0x3] %v1997_v30  ;;  %2016 = vst [vmem:[%s3326_s8 + $0x70] sm:$0x3] %v1998_v24 }
 0x222   :  { %2017 = vst [vmem:[%s3326_s8 + $0x78] sm:$0x3] %v1999_v0  ;;  %2018 = vst [vmem:[%s3326_s8 + $0x80] sm:$0x3] %v2000_v33 }
 0x223   :  { %2019 = vst [vmem:[%s3326_s8 + $0x88] sm:$0x3] %v2001_v31 }

// kernel: mnist_forward.5
= control target key start
LH: loop header
LB: loop body
LE: loop exit
PB: predicated region body
PF: predicated region fallthrough
CT: control target
= control target key end

     0   :  { %v514_v7 = vmov 0.0|0.0   ;;  %vm515_vm0 = vmmov 0   ;;  %v516_v8 = vmov 0.0   ;;  %s731_s0 = inlined_call_operand.vmem [shape: f32[8,320], index: 0, kind: input, shape index: {}]   ;;  %s732_s1 = inlined_call_operand.vmem [shape: f32[320,50], index: 1, kind: input, shape index: {}]   ;;  %s733_s2 = inlined_call_operand.vmem [shape: f32[1,50], index: 2, kind: input, shape index: {}]   ;;  %s734_s3 = inlined_call_operand.vmem [shape: f32[50,10], index: 3, kind: input, shape index: {}]   ;;  %s735_s4 = inlined_call_operand.vmem [shape: f32[1,10], index: 4, kind: input, shape index: {}]   ;;  %s736_s5 = inlined_call_operand.hbm [shape: f32[8,10], index: 5, kind: output, shape index: {}]  }
   0x1   :  { %v40_v0 = vld [vmem:[%s732_s1 + $0x80] sm:$0xff]  ;;  %v41_v1 = vld [vmem:[%s732_s1 + $0x88] sm:$0xff]  ;;  %v42_v5 = vld [vmem:[%s732_s1 + $0x90] sm:$0xff]  ;;  %461 = vmatprep.subr.bf16.mxu1 %v514_v7  ;;  %409 = vmatprep.mubr.msk.f32.mxu1 %vm515_vm0, %v516_v8 }
   0x2   :  { %v24_v2 = vld [vmem:[%s732_s1] sm:$0xff]  ;;  %v429_v3 = vpack.c.bf16 %v41_v1, %v40_v0  ;;  %v25_v4 = vld [vmem:[%s732_s1 + $0x8] sm:$0xff]  ;;  %v43_v6 = vld [vmem:[%s732_s1 + $0x98] sm:$0xff] }
   0x3   :  { %v431_v9 = vpack.c.bf16 %v25_v4, %v24_v2  ;;  %v433_v10 = vpack.c.bf16 %v43_v6, %v42_v5  ;;  %v26_v11 = vld [vmem:[%s732_s1 + $0x10] sm:$0xff]  ;;  %v27_v12 = vld [vmem:[%s732_s1 + $0x18] sm:$0xff]  ;;  %v44_v13 = vld [vmem:[%s732_s1 + $0xa0] sm:$0xff] }
   0x4   :  { %430 = vmatprep.subr.bf16.mxu0 %v429_v3  ;;  %v45_v14 = vld [vmem:[%s732_s1 + $0xa8] sm:$0xff]  ;;  %v435_v15 = vpack.c.bf16 %v27_v12, %v26_v11  ;;  %v28_v17 = vld [vmem:[%s732_s1 + $0x20] sm:$0xff]  ;;  %v46_v19 = vld [vmem:[%s732_s1 + $0xb0] sm:$0xff] }
   0x5   :  { %432 = vmatpush3.bf16.msra.mxu0 %v431_v9  ;;  %v437_v16 = vpack.c.bf16 %v45_v14, %v44_v13  ;;  %v29_v18 = vld [vmem:[%s732_s1 + $0x28] sm:$0xff]  ;;  %v47_v20 = vld [vmem:[%s732_s1 + $0xb8] sm:$0xff]  ;;  %v56_v22 = vld [vmem:[%s732_s1 + $0x100] sm:$0xff] }
   0x6   :  { %434 = vmatprep.subr.bf16.mxu0 %v433_v10  ;;  %v439_v21 = vpack.c.bf16 %v29_v18, %v28_v17  ;;  %v57_v23 = vld [vmem:[%s732_s1 + $0x108] sm:$0xff]  ;;  %v441_v24 = vpack.c.bf16 %v47_v20, %v46_v19  ;;  %v30_v25 = vld [vmem:[%s732_s1 + $0x30] sm:$0xff]  ;;  %v31_v26 = vld [vmem:[%s732_s1 + $0x38] sm:$0xff] }
   0x7   :  { %v48_v27 = vld [vmem:[%s732_s1 + $0xc0] sm:$0xff]  ;;  %v462_v28 = vpack.c.bf16 %v57_v23, %v56_v22  ;;  %v49_v29 = vld [vmem:[%s732_s1 + $0xc8] sm:$0xff]  ;;  %v58_v30 = vld [vmem:[%s732_s1 + $0x110] sm:$0xff]  ;;  %v443_v33 = vpack.c.bf16 %v31_v26, %v30_v25 }
   0x8   :  { %v59_v31 = vld [vmem:[%s732_s1 + $0x118] sm:$0xff]  ;;  %v60_v34 = vld [vmem:[%s732_s1 + $0x120] sm:$0xff]  ;;  %v61_v35 = vld [vmem:[%s732_s1 + $0x128] sm:$0xff]  ;;  %v445_v37 = vpack.c.bf16 %v49_v29, %v48_v27 }
   0x9   :  { %436 = vmatpush3.bf16.msra.mxu0 %v435_v15  ;;  %463 = vmatpush3.bf16.msra.mxu1 %v462_v28  ;;  %v465_v32 = vpack.c.bf16 %v59_v31, %v58_v30  ;;  %v22_v36 = vld [vmem:[%s731_s0 + $0x8] sm:$0xff]  ;;  %v32_v38 = vld [vmem:[%s732_s1 + $0x40] sm:$0xff]  ;;  %v50_v40 = vld [vmem:[%s732_s1 + $0xd0] sm:$0xff]  ;;  %v468_v42 = vpack.c.bf16 %v61_v35, %v60_v34 }
   0xa   :  { %438 = vmatprep.subr.bf16.mxu0 %v437_v16  ;;  %464 = vmatprep.subr.bf16.mxu1 %v514_v7  ;;  %v33_v39 = vld [vmem:[%s732_s1 + $0x48] sm:$0xff]  ;;  %v51_v41 = vld [vmem:[%s732_s1 + $0xd8] sm:$0xff] }
   0xb   :  { %139 = vmatprep.mubr.f32.mxu0 %v22_v36 }
   0xd   :  { %440 = vmatpush3.bf16.msra.mxu0 %v439_v21  ;;  %466 = vmatpush3.bf16.msra.mxu1 %v465_v32 }
   0xe   :  { %442 = vmatprep.subr.bf16.mxu0 %v441_v24 }
   0xf   :  { %10 = vsyncpa [#allocation3], 0  ;;  %v447_v43 = vpack.c.bf16 %v33_v39, %v32_v38  ;;  %467 = vmatprep.subr.bf16.mxu1 %v514_v7  ;;  %v62_v44 = vld [vmem:[%s732_s1 + $0x130] sm:$0xff]  ;;  %v63_v45 = vld [vmem:[%s732_s1 + $0x138] sm:$0xff]  ;;  %v449_v46 = vpack.c.bf16 %v51_v41, %v50_v40  ;;  %vm71_vm1 = vcmask 523264   ;;  %vm234_vm2 = vcmask 1041408  }
  0x10   :  { %v34_v47 = vld [vmem:[%s732_s1 + $0x50] sm:$0xff]  ;;  %v35_v48 = vld [vmem:[%s732_s1 + $0x58] sm:$0xff]  ;;  %v52_v49 = vld [vmem:[%s732_s1 + $0xe0] sm:$0xff]  ;;  %v471_v51 = vpack.c.bf16 %v63_v45, %v62_v44  ;;  %vm230_vm3 = vcmask 408576   ;;  %vm308_vm4 = vcmask 80896  }
  0x11   :  { %444 = vmatpush3.bf16.msra.mxu0 %v443_v33  ;;  %v53_v50 = vld [vmem:[%s732_s1 + $0xe8] sm:$0xff]  ;;  %469 = vmatpush3.bf16.msra.mxu1 %v468_v42  ;;  %v451_v52 = vpack.c.bf16 %v35_v48, %v34_v47  ;;  %v216_v53 = vld [vmem:[%s734_s3] sm:$0xff]  ;;  %v54_v58 = vld [vmem:[%s732_s1 + $0xf0] sm:$0xff] }
  0x12   :  { %446 = vmatprep.subr.bf16.mxu0 %v445_v37  ;;  %470 = vmatprep.subr.bf16.mxu1 %v514_v7  ;;  %v217_v54 = vld [vmem:[%s734_s3 + $0x8] sm:$0xff]  ;;  %v453_v55 = vpack.c.bf16 %v53_v50, %v52_v49  ;;  %v36_v56 = vld [vmem:[%s732_s1 + $0x60] sm:$0xff]  ;;  %v55_v59 = vld [vmem:[%s732_s1 + $0xf8] sm:$0xff] }
  0x13   :  { %v37_v57 = vld [vmem:[%s732_s1 + $0x68] sm:$0xff]  ;;  %v23_v60 = vld [vmem:[%s731_s0 + $0x10] sm:$0xff]  ;;  %v474_v61 = vpack.c.bf16 %v217_v54, %v216_v53  ;;  %v457_v63 = vpack.c.bf16 %v55_v59, %v54_v58  ;;  %v39_v1 = vld [vmem:[%s732_s1 + $0x78] sm:$0xff] }
  0x14   :  { %v455_v62 = vpack.c.bf16 %v37_v57, %v36_v56  ;;  %v38_v0 = vld [vmem:[%s732_s1 + $0x70] sm:$0xff]  ;;  %v21_v3 = vld [vmem:[%s731_s0] sm:$0xff]  ;;  %v219_v5 = vld [vmem:[%s734_s3 + $0x18] sm:$0xff] }
  0x15   :  { %448 = vmatpush3.bf16.msra.mxu0 %v447_v43  ;;  %472 = vmatpush3.bf16.msra.mxu1 %v471_v51  ;;  %v459_v2 = vpack.c.bf16 %v39_v1, %v38_v0  ;;  %v218_v4 = vld [vmem:[%s734_s3 + $0x10] sm:$0xff]  ;;  %v220_v9 = vld [vmem:[%s734_s3 + $0x20] sm:$0xff]  ;;  %v221_v10 = vld [vmem:[%s734_s3 + $0x28] sm:$0xff] }
  0x16   :  { %450 = vmatprep.subr.bf16.mxu0 %v449_v46  ;;  %473 = vmatprep.subr.bf16.mxu1 %v514_v7  ;;  %v477_v6 = vpack.c.bf16 %v219_v5, %v218_v4  ;;  %v480_v11 = vpack.c.bf16 %v221_v10, %v220_v9  ;;  %v222_v12 = vld [vmem:[%s734_s3 + $0x30] sm:$0x3]  ;;  %v336_v16 = vld [vmem:[%s733_s2] ss:$0 sm:$0xff]  ;;  %s517_s2 = smov [#allocation2]  }
  0x17   :  { %s328_s3 = sshll.u32 %s517_s2, 4  ;;  %s329_s3 = int_to_ptr.vmem [resolvable:$true] %s328_s3 }
  0x18   :  { %410 = vmatmul.mubr.msk.f32.vlgmr.msra.gmra.mrb[0].mxu1 %vm71_vm1, %v23_v60  ;;  %p495_p1 = scmp.lt.s32.totalorder %s329_s3, %s329_s3 }
  0x19   :  { %452 = vmatpush3.bf16.msra.mxu0 %v451_v52  ;;  %475 = vmatpush3.bf16.msra.mxu1 %v474_v61 }
  0x1a   :  { %454 = vmatprep.subr.bf16.mxu0 %v453_v55  ;;  %426 = vmatprep.mubr.msk.f32.mxu1 %vm515_vm0, %v516_v8 }
  0x1b   :  { %476 = vmatprep.subr.bf16.mxu1 %v514_v7 }
  0x1d   :  { %456 = vmatpush3.bf16.msra.mxu0 %v455_v62  ;;  %478 = vmatpush3.bf16.msra.mxu1 %v477_v6 }
  0x1e   :  { %458 = vmatprep.subr.bf16.mxu0 %v457_v63  ;;  %479 = vmatprep.subr.bf16.mxu1 %v514_v7 }
  0x21   :  { %460 = vmatpush3.bf16.msra.mxu0 %v459_v2  ;;  %481 = vmatpush3.bf16.msra.mxu1 %v480_v11 }
  0x22   :  { %424 = vmatprep.subr.mxu1 %v516_v8  ;;  %v338_v8 = vld [vmem:[%s735_s4] ss:$0 sm:$0xff]  ;;  %s490_s4 = scalar_lea.vmem %s329_s3, 128 }
  0x23   :  { %p491_p0 = scmp.ne.s32.totalorder %s329_s3, %s490_s4  ;;  %p496_p2 = scmp.lt.s32.totalorder %s490_s4, %s490_s4 }
  0x24   :  { %140 = vmatmul.mubr.f32.vlgmr.msra.gmra.mrb[0].mxu0 %v21_v3 }
  0x25   :  { %425 = vmatpush3.msk.msra.mxu1 %vm234_vm2, %v222_v12  ;;  %p497_p3 = por %p496_p2, %p495_p1 }
  0x27   :  { %p498_p4 = pnand %p497_p3, %p491_p0 }
  0xeb   :  { %v211_v13 = vpop.f32.mrb[0].mxu1 }
  0xec   :  { %v411_v7 = vpop.f32.mrb[1].mxu1 }
  0xf7   :  { %v373_v14 = vpop.f32.mrb[0].mxu0 }
  0xf8   :  { %v374_v15 = vpop.f32.mrb[1].mxu0 }
  0xf9   :  { %v375_v17 = vadd.f32 %v374_v15, %v373_v14 }
  0xfb   :  { %v142_v18 = vadd.f32 %v375_v17, %v336_v16 }
  0xfd   :  { %v212_v19 = vadd.f32 %v211_v13, %v142_v18 }
  0xff   :  { %v215_v20 = vmax.f32 %v212_v19, 0.0 }
 0x101   :  { %427 = vmatmul.mubr.msk.f32.vlgmr.msra.gmra.mrb[2].mxu1 %vm230_vm3, %v215_v20 }
 0x1d4   :  { %v304_v21 = vpop.f32.mrb[2].mxu1 }
 0x1d5   :  { %v305_v22 = vadd.f32 %v338_v8, %v304_v21  ;;  %v428_v23 = vpop.f32.mrb[3].mxu1 }
 0x1d7   :  { %v309_v24 = vsel %vm308_vm4, %v305_v22, -inf }
 0x1d8   :  { %310 = vmax.xlane.f32.xlu0 %v309_v24 }
 0x265   :  { %v311_v25 = vpop.xlane.xlu0 %310 }
 0x266   :  { %v312_v26 = vsub.f32 %v305_v22, %v311_v25 }
 0x268   :  { %v313_v27 = vmul.f32 1.442695, %v312_v26 }
 0x26a   :  { %486 = vpow2.f32 %v313_v27 }
 0x274   :  { %v487_v28 = vpop.eup %486 }
 0x275   :  { %v315_v29 = vsel %vm308_vm4, %v487_v28, 0.0 }
 0x276   :  { %316 = vadd.xlane.f32.xlu0 %v315_v29 }
 0x303   :  { %v317_v30 = vpop.xlane.xlu0 %316 }
 0x304   :  { %488 = vlog2.f32 %v317_v30 }
 0x30e   :  { %v489_v31 = vpop.eup %488 }
 0x30f   :  { %v319_v32 = vmul.f32 0.6931472, %v489_v31 }
 0x311   :  { %v320_v33 = vsub.f32 %v312_v26, %v319_v32 }
 0x313   :  { %321 = vst.msk [vmem:[#allocation2] sm:$0xff] %vm308_vm4, %v320_v33 }
 0x314   :  { %501 = shalt.err (!%p498_p4)
}
 0x315   :  { %s502_s22 = scalar_lea.hbm %s736_s5, 128 }
 0x316   :  { %p503_p5 = scmp.ne.s32.totalorder %s736_s5, %s502_s22  ;;  %p506_p6 = scmp.lt.u32.totalorder %s502_s22, %s736_s5 }
 0x318   :  { %p508_p7 = pnand %p506_p6, %p503_p5 }
 0x31a   :  { %511 = shalt.err (!%p508_p7)
}
 0x31b   :  { %331 = dma.vmem_to_hbm [thread:$0]  %s329_s3, 128, %s736_s5, [#allocation3]  }
 0x31c   :  { %512 = dma.done.wait [#allocation3], 128  }
 0x31d   :  { %513 = vsyncadd [#allocation3], 4294967168 }
 0x31e   :  { %335 = vsyncpa [#allocation3], 1 }

// kernel: mnist_forward.4
= control target key start
LH: loop header
LB: loop body
LE: loop exit
PB: predicated region body
PF: predicated region fallthrough
CT: control target
= control target key end

     0   :  { %v909_v3 = vmov 0   ;;  %vm520_vm0 = vcmask 1043456   ;;  %s1429_s0 = inlined_call_operand.vmem [shape: f32[256,128], index: 0, kind: input, shape index: {}]   ;;  %s1430_s1 = inlined_call_operand.vmem [shape: f32[256,128], index: 1, kind: input, shape index: {}]   ;;  %s1431_s4 = inlined_call_operand.vmem [shape: f32[20,256], index: 4, kind: input, shape index: {}]   ;;  %s1432_s2 = inlined_call_operand.vmem [shape: f32[256,128], index: 2, kind: input, shape index: {}]   ;;  %s1433_s3 = inlined_call_operand.vmem [shape: f32[256,128], index: 3, kind: input, shape index: {}]   ;;  %s1434_s5 = inlined_call_operand.vmem [shape: f32[20,1], index: 5, kind: input, shape index: {}]   ;;  %s1435_s6 = inlined_call_operand.vmem [shape: f32[20,1], index: 6, kind: input, shape index: {}]   ;;  %s1436_s7 = inlined_call_operand.vmem [shape: f32[20,1], index: 7, kind: input, shape index: {}]   ;;  %s1437_s8 = inlined_call_operand.vmem [shape: f32[20,128], index: 8, kind: output, shape index: {}]  }
   0x1   :  { %v51_v0 = vld [vmem:[%s1429_s0 + $0x80] sm:$0xff]  ;;  %v52_v1 = vld [vmem:[%s1429_s0 + $0x88] sm:$0xff]  ;;  %901 = vset.pattern.permute.xlu0 %v909_v3  ;;  %902 = vset.pattern.permute.xlu1 %v909_v3  ;;  %v53_v12 = vld [vmem:[%s1429_s0 + $0x90] sm:$0xff] }
   0x2   :  { %v163_v2 = vld [vmem:[%s1430_s1 + $0x80] sm:$0xff]  ;;  %v772_v4 = vpack.c.bf16 %v52_v1, %v51_v0  ;;  %v164_v5 = vld [vmem:[%s1430_s1 + $0x88] sm:$0xff]  ;;  %v54_v14 = vld [vmem:[%s1429_s0 + $0x98] sm:$0xff] }
   0x3   :  { %v35_v6 = vld [vmem:[%s1429_s0] sm:$0xff]  ;;  %v36_v7 = vld [vmem:[%s1429_s0 + $0x8] sm:$0xff]  ;;  %v804_v8 = vpack.c.bf16 %v164_v5, %v163_v2  ;;  %v165_v15 = vld [vmem:[%s1430_s1 + $0x90] sm:$0xff]  ;;  %v776_v17 = vpack.c.bf16 %v54_v14, %v53_v12 }
   0x4   :  { %v774_v9 = vpack.c.bf16 %v36_v7, %v35_v6  ;;  %v147_v10 = vld [vmem:[%s1430_s1] sm:$0xff]  ;;  %v148_v11 = vld [vmem:[%s1430_s1 + $0x8] sm:$0xff]  ;;  %773 = vmatprep.subr.bf16.mxu0 %v772_v4  ;;  %v166_v16 = vld [vmem:[%s1430_s1 + $0x98] sm:$0xff] }
   0x5   :  { %v806_v13 = vpack.c.bf16 %v148_v11, %v147_v10  ;;  %805 = vmatprep.subr.bf16.mxu1 %v804_v8  ;;  %v808_v18 = vpack.c.bf16 %v166_v16, %v165_v15  ;;  %v37_v19 = vld [vmem:[%s1429_s0 + $0x10] sm:$0xff]  ;;  %v38_v20 = vld [vmem:[%s1429_s0 + $0x18] sm:$0xff]  ;;  %v55_v24 = vld [vmem:[%s1429_s0 + $0xa0] sm:$0xff] }
   0x6   :  { %775 = vmatpush3.bf16.msra.mxu0 %v774_v9  ;;  %v149_v21 = vld [vmem:[%s1430_s1 + $0x10] sm:$0xff]  ;;  %v778_v22 = vpack.c.bf16 %v38_v20, %v37_v19  ;;  %v150_v23 = vld [vmem:[%s1430_s1 + $0x18] sm:$0xff]  ;;  %v56_v25 = vld [vmem:[%s1429_s0 + $0xa8] sm:$0xff] }
   0x7   :  { %807 = vmatpush3.bf16.msra.mxu1 %v806_v13  ;;  %777 = vmatprep.subr.bf16.mxu0 %v776_v17  ;;  %v810_v26 = vpack.c.bf16 %v150_v23, %v149_v21  ;;  %v780_v27 = vpack.c.bf16 %v56_v25, %v55_v24  ;;  %v167_v28 = vld [vmem:[%s1430_s1 + $0xa0] sm:$0xff]  ;;  %v168_v29 = vld [vmem:[%s1430_s1 + $0xa8] sm:$0xff]  ;;  %v57_v36 = vld [vmem:[%s1429_s0 + $0xb0] sm:$0xff] }
   0x8   :  { %809 = vmatprep.subr.bf16.mxu1 %v808_v18  ;;  %v39_v30 = vld [vmem:[%s1429_s0 + $0x20] sm:$0xff]  ;;  %v812_v31 = vpack.c.bf16 %v168_v29, %v167_v28  ;;  %v40_v32 = vld [vmem:[%s1429_s0 + $0x28] sm:$0xff]  ;;  %v58_v37 = vld [vmem:[%s1429_s0 + $0xb8] sm:$0xff] }
   0x9   :  { %v151_v33 = vld [vmem:[%s1430_s1 + $0x20] sm:$0xff]  ;;  %v152_v34 = vld [vmem:[%s1430_s1 + $0x28] sm:$0xff]  ;;  %v782_v35 = vpack.c.bf16 %v40_v32, %v39_v30  ;;  %v169_v38 = vld [vmem:[%s1430_s1 + $0xb0] sm:$0xff]  ;;  %v784_v40 = vpack.c.bf16 %v58_v37, %v57_v36 }
   0xa   :  { %779 = vmatpush3.bf16.msra.mxu0 %v778_v22  ;;  %v814_v39 = vpack.c.bf16 %v152_v34, %v151_v33  ;;  %v170_v41 = vld [vmem:[%s1430_s1 + $0xb8] sm:$0xff]  ;;  %v41_v42 = vld [vmem:[%s1429_s0 + $0x30] sm:$0xff]  ;;  %v59_v47 = vld [vmem:[%s1429_s0 + $0xc0] sm:$0xff] }
   0xb   :  { %811 = vmatpush3.bf16.msra.mxu1 %v810_v26  ;;  %781 = vmatprep.subr.bf16.mxu0 %v780_v27  ;;  %v42_v43 = vld [vmem:[%s1429_s0 + $0x38] sm:$0xff]  ;;  %v816_v44 = vpack.c.bf16 %v170_v41, %v169_v38  ;;  %v153_v45 = vld [vmem:[%s1430_s1 + $0x30] sm:$0xff]  ;;  %v60_v48 = vld [vmem:[%s1429_s0 + $0xc8] sm:$0xff] }
   0xc   :  { %813 = vmatprep.subr.bf16.mxu1 %v812_v31  ;;  %v154_v46 = vld [vmem:[%s1430_s1 + $0x38] sm:$0xff]  ;;  %v171_v49 = vld [vmem:[%s1430_s1 + $0xc0] sm:$0xff]  ;;  %v172_v50 = vld [vmem:[%s1430_s1 + $0xc8] sm:$0xff]  ;;  %v786_v51 = vpack.c.bf16 %v42_v43, %v41_v42  ;;  %v788_v53 = vpack.c.bf16 %v60_v48, %v59_v47 }
   0xd   :  { %v818_v52 = vpack.c.bf16 %v154_v46, %v153_v45  ;;  %v43_v54 = vld [vmem:[%s1429_s0 + $0x40] sm:$0xff]  ;;  %v44_v55 = vld [vmem:[%s1429_s0 + $0x48] sm:$0xff]  ;;  %v820_v57 = vpack.c.bf16 %v172_v50, %v171_v49  ;;  %v61_v59 = vld [vmem:[%s1429_s0 + $0xd0] sm:$0xff] }
   0xe   :  { %783 = vmatpush3.bf16.msra.mxu0 %v782_v35  ;;  %v155_v56 = vld [vmem:[%s1430_s1 + $0x40] sm:$0xff]  ;;  %v156_v58 = vld [vmem:[%s1430_s1 + $0x48] sm:$0xff]  ;;  %v62_v60 = vld [vmem:[%s1429_s0 + $0xd8] sm:$0xff]  ;;  %v790_v63 = vpack.c.bf16 %v44_v55, %v43_v54 }
   0xf   :  { %815 = vmatpush3.bf16.msra.mxu1 %v814_v39  ;;  %785 = vmatprep.subr.bf16.mxu0 %v784_v40  ;;  %v173_v61 = vld [vmem:[%s1430_s1 + $0xd0] sm:$0xff]  ;;  %v174_v62 = vld [vmem:[%s1430_s1 + $0xd8] sm:$0xff]  ;;  %v822_v0 = vpack.c.bf16 %v156_v58, %v155_v56  ;;  %v792_v1 = vpack.c.bf16 %v62_v60, %v61_v59  ;;  %v63_v7 = vld [vmem:[%s1429_s0 + $0xe0] sm:$0xff] }
  0x10   :  { %817 = vmatprep.subr.bf16.mxu1 %v816_v44  ;;  %v45_v2 = vld [vmem:[%s1429_s0 + $0x50] sm:$0xff]  ;;  %v46_v3 = vld [vmem:[%s1429_s0 + $0x58] sm:$0xff]  ;;  %v824_v5 = vpack.c.bf16 %v174_v62, %v173_v61  ;;  %v64_v8 = vld [vmem:[%s1429_s0 + $0xe8] sm:$0xff] }
  0x11   :  { %v157_v4 = vld [vmem:[%s1430_s1 + $0x50] sm:$0xff]  ;;  %v158_v6 = vld [vmem:[%s1430_s1 + $0x58] sm:$0xff]  ;;  %v175_v9 = vld [vmem:[%s1430_s1 + $0xe0] sm:$0xff]  ;;  %v794_v11 = vpack.c.bf16 %v46_v3, %v45_v2  ;;  %v796_v14 = vpack.c.bf16 %v64_v8, %v63_v7 }
  0x12   :  { %787 = vmatpush3.bf16.msra.mxu0 %v786_v51  ;;  %v176_v10 = vld [vmem:[%s1430_s1 + $0xe8] sm:$0xff]  ;;  %v47_v12 = vld [vmem:[%s1429_s0 + $0x60] sm:$0xff]  ;;  %v826_v13 = vpack.c.bf16 %v158_v6, %v157_v4  ;;  %v65_v20 = vld [vmem:[%s1429_s0 + $0xf0] sm:$0xff] }
  0x13   :  { %819 = vmatpush3.bf16.msra.mxu1 %v818_v52  ;;  %789 = vmatprep.subr.bf16.mxu0 %v788_v53  ;;  %v48_v15 = vld [vmem:[%s1429_s0 + $0x68] sm:$0xff]  ;;  %v159_v16 = vld [vmem:[%s1430_s1 + $0x60] sm:$0xff]  ;;  %v828_v18 = vpack.c.bf16 %v176_v10, %v175_v9  ;;  %v66_v21 = vld [vmem:[%s1429_s0 + $0xf8] sm:$0xff] }
  0x14   :  { %821 = vmatprep.subr.bf16.mxu1 %v820_v57  ;;  %v1123_v17 = vld [vmem:[%s1431_s4 + $0x8] sm:$0xff]  ;;  %v177_v22 = vld [vmem:[%s1430_s1 + $0xf0] sm:$0xff]  ;;  %v178_v23 = vld [vmem:[%s1430_s1 + $0xf8] sm:$0xff]  ;;  %v798_v24 = vpack.c.bf16 %v48_v15, %v47_v12  ;;  %v800_v26 = vpack.c.bf16 %v66_v21, %v65_v20 }
  0x15   :  { %v160_v19 = vld [vmem:[%s1430_s1 + $0x68] sm:$0xff]  ;;  %131 = vmatprep.mubr.f32.mxu0 %v1123_v17  ;;  %243 = vmatprep.mubr.f32.mxu1 %v1123_v17  ;;  %v49_v27 = vld [vmem:[%s1429_s0 + $0x70] sm:$0xff]  ;;  %v50_v28 = vld [vmem:[%s1429_s0 + $0x78] sm:$0xff]  ;;  %v832_v30 = vpack.c.bf16 %v178_v23, %v177_v22 }
  0x16   :  { %791 = vmatpush3.bf16.msra.mxu0 %v790_v63  ;;  %v830_v25 = vpack.c.bf16 %v160_v19, %v159_v16  ;;  %v161_v29 = vld [vmem:[%s1430_s1 + $0x70] sm:$0xff]  ;;  %v162_v31 = vld [vmem:[%s1430_s1 + $0x78] sm:$0xff]  ;;  %v278_v32 = vld [vmem:[%s1432_s2 + $0x80] sm:$0xff]  ;;  %v802_v36 = vpack.c.bf16 %v50_v28, %v49_v27 }
  0x17   :  { %823 = vmatpush3.bf16.msra.mxu1 %v822_v0  ;;  %793 = vmatprep.subr.bf16.mxu0 %v792_v1  ;;  %v279_v33 = vld [vmem:[%s1432_s2 + $0x88] sm:$0xff]  ;;  %v390_v34 = vld [vmem:[%s1433_s3 + $0x80] sm:$0xff]  ;;  %v834_v37 = vpack.c.bf16 %v162_v31, %v161_v29  ;;  %v280_v44 = vld [vmem:[%s1432_s2 + $0x90] sm:$0xff] }
  0x18   :  { %825 = vmatprep.subr.bf16.mxu1 %v824_v5  ;;  %v391_v35 = vld [vmem:[%s1433_s3 + $0x88] sm:$0xff]  ;;  %v836_v38 = vpack.c.bf16 %v279_v33, %v278_v32  ;;  %v262_v39 = vld [vmem:[%s1432_s2] sm:$0xff]  ;;  %v281_v45 = vld [vmem:[%s1432_s2 + $0x98] sm:$0xff] }
  0x19   :  { %v263_v40 = vld [vmem:[%s1432_s2 + $0x8] sm:$0xff]  ;;  %v374_v41 = vld [vmem:[%s1433_s3] sm:$0xff]  ;;  %v868_v42 = vpack.c.bf16 %v391_v35, %v390_v34  ;;  %v392_v46 = vld [vmem:[%s1433_s3 + $0x90] sm:$0xff]  ;;  %v840_v51 = vpack.c.bf16 %v281_v45, %v280_v44 }
  0x1a   :  { %795 = vmatpush3.bf16.msra.mxu0 %v794_v11  ;;  %v375_v43 = vld [vmem:[%s1433_s3 + $0x8] sm:$0xff]  ;;  %v393_v47 = vld [vmem:[%s1433_s3 + $0x98] sm:$0xff]  ;;  %v1193_v48 = vld [vmem:[%s1431_s4] sm:$0xff]  ;;  %v838_v49 = vpack.c.bf16 %v263_v40, %v262_v39 }
  0x1b   :  { %827 = vmatpush3.bf16.msra.mxu1 %v826_v13  ;;  %797 = vmatprep.subr.bf16.mxu0 %v796_v14  ;;  %v870_v50 = vpack.c.bf16 %v375_v43, %v374_v41  ;;  %v264_v52 = vld [vmem:[%s1432_s2 + $0x10] sm:$0xff]  ;;  %v265_v53 = vld [vmem:[%s1432_s2 + $0x18] sm:$0xff]  ;;  %v872_v55 = vpack.c.bf16 %v393_v47, %v392_v46  ;;  %v282_v57 = vld [vmem:[%s1432_s2 + $0xa0] sm:$0xff] }
  0x1c   :  { %829 = vmatprep.subr.bf16.mxu1 %v828_v18  ;;  %v376_v54 = vld [vmem:[%s1433_s3 + $0x10] sm:$0xff]  ;;  %v377_v56 = vld [vmem:[%s1433_s3 + $0x18] sm:$0xff]  ;;  %v283_v58 = vld [vmem:[%s1432_s2 + $0xa8] sm:$0xff]  ;;  %v842_v61 = vpack.c.bf16 %v265_v53, %v264_v52 }
  0x1d   :  { %v394_v59 = vld [vmem:[%s1433_s3 + $0xa0] sm:$0xff]  ;;  %v395_v60 = vld [vmem:[%s1433_s3 + $0xa8] sm:$0xff]  ;;  %v874_v0 = vpack.c.bf16 %v377_v56, %v376_v54  ;;  %v844_v1 = vpack.c.bf16 %v283_v58, %v282_v57  ;;  %v284_v4 = vld [vmem:[%s1432_s2 + $0xb0] sm:$0xff] }
  0x1e   :  { %799 = vmatpush3.bf16.msra.mxu0 %v798_v24  ;;  %v266_v62 = vld [vmem:[%s1432_s2 + $0x20] sm:$0xff]  ;;  %v267_v63 = vld [vmem:[%s1432_s2 + $0x28] sm:$0xff]  ;;  %v876_v5 = vpack.c.bf16 %v395_v60, %v394_v59  ;;  %v285_v6 = vld [vmem:[%s1432_s2 + $0xb8] sm:$0xff] }
  0x1f   :  { %831 = vmatpush3.bf16.msra.mxu1 %v830_v25  ;;  %801 = vmatprep.subr.bf16.mxu0 %v800_v26  ;;  %v378_v2 = vld [vmem:[%s1433_s3 + $0x20] sm:$0xff]  ;;  %v379_v3 = vld [vmem:[%s1433_s3 + $0x28] sm:$0xff]  ;;  %v1242_v7 = vld [vmem:[%s1431_s4 + $0x18] sm:$0xff]  ;;  %v846_v11 = vpack.c.bf16 %v267_v63, %v266_v62  ;;  %v848_v15 = vpack.c.bf16 %v285_v6, %v284_v4 }
  0x20   :  { %833 = vmatprep.subr.bf16.mxu1 %v832_v30  ;;  %v1247_v8 = vld [vmem:[%s1431_s4 + $0x10] sm:$0xff]  ;;  %v397_v10 = vld [vmem:[%s1433_s3 + $0xb8] sm:$0xff]  ;;  %v878_v14 = vpack.c.bf16 %v379_v3, %v378_v2  ;;  %v1270_v18 = vld [vmem:[%s1431_s4 + $0x28] sm:$0xf] }
  0x21   :  { %v396_v9 = vld [vmem:[%s1433_s3 + $0xb0] sm:$0xff]  ;;  %v269_v13 = vld [vmem:[%s1432_s2 + $0x38] sm:$0xff]  ;;  %v1275_v19 = vld [vmem:[%s1431_s4 + $0x20] sm:$0xf] }
  0x22   :  { %803 = vmatpush3.bf16.msra.mxu0 %v802_v36  ;;  %v268_v12 = vld [vmem:[%s1432_s2 + $0x30] sm:$0xff]  ;;  %v880_v20 = vpack.c.bf16 %v397_v10, %v396_v9  ;;  %v381_v21 = vld [vmem:[%s1433_s3 + $0x38] sm:$0xff]  ;;  %v286_v22 = vld [vmem:[%s1432_s2 + $0xc0] sm:$0xff] }
  0x23   :  { %835 = vmatpush3.bf16.msra.mxu1 %v834_v37  ;;  %837 = vmatprep.subr.bf16.mxu0 %v836_v38  ;;  %v380_v16 = vld [vmem:[%s1433_s3 + $0x30] sm:$0xff]  ;;  %v287_v23 = vld [vmem:[%s1432_s2 + $0xc8] sm:$0xff]  ;;  %v398_v24 = vld [vmem:[%s1433_s3 + $0xc0] sm:$0xff]  ;;  %v850_v26 = vpack.c.bf16 %v269_v13, %v268_v12 }
  0x24   :  { %869 = vmatprep.subr.bf16.mxu1 %v868_v42  ;;  %v399_v25 = vld [vmem:[%s1433_s3 + $0xc8] sm:$0xff]  ;;  %v270_v27 = vld [vmem:[%s1432_s2 + $0x40] sm:$0xff]  ;;  %v882_v28 = vpack.c.bf16 %v381_v21, %v380_v16  ;;  %v852_v29 = vpack.c.bf16 %v287_v23, %v286_v22  ;;  %v494_v32 = vld [vmem:[%s1434_s5 + $0x10] sm:$0xf] }
  0x25   :  { %132 = vmatmul.mubr.f32.vlgmr.msra.gmra.mrb[0].mxu0 %v1193_v48  ;;  %v271_v30 = vld [vmem:[%s1432_s2 + $0x48] sm:$0xff]  ;;  %v382_v31 = vld [vmem:[%s1433_s3 + $0x40] sm:$0xff]  ;;  %v884_v33 = vpack.c.bf16 %v399_v25, %v398_v24  ;;  %v288_v35 = vld [vmem:[%s1432_s2 + $0xd0] sm:$0xff]  ;;  %507 = vperm.xlu0 %901, %v494_v32  }
  0x26   :  { %244 = vmatmul.mubr.f32.vlgmr.msra.gmra.mrb[0].mxu1 %v1193_v48  ;;  %839 = vmatpush3.bf16.msra.mxu0 %v838_v49  ;;  %v383_v34 = vld [vmem:[%s1433_s3 + $0x48] sm:$0xff]  ;;  %v289_v36 = vld [vmem:[%s1432_s2 + $0xd8] sm:$0xff]  ;;  %v400_v37 = vld [vmem:[%s1433_s3 + $0xd0] sm:$0xff]  ;;  %v854_v40 = vpack.c.bf16 %v271_v30, %v270_v27 }
  0x27   :  { %871 = vmatpush3.bf16.msra.mxu1 %v870_v50  ;;  %841 = vmatprep.subr.bf16.mxu0 %v840_v51  ;;  %v401_v38 = vld [vmem:[%s1433_s3 + $0xd8] sm:$0xff]  ;;  %v493_v39 = vld [vmem:[%s1434_s5 + $0x8] sm:$0xff]  ;;  %v272_v41 = vld [vmem:[%s1432_s2 + $0x50] sm:$0xff]  ;;  %v886_v42 = vpack.c.bf16 %v383_v34, %v382_v31  ;;  %v856_v43 = vpack.c.bf16 %v289_v36, %v288_v35 }
  0x28   :  { %873 = vmatprep.subr.bf16.mxu1 %v872_v55  ;;  %136 = vmatprep.mubr.f32.mxu0 %v1242_v7  ;;  %v273_v44 = vld [vmem:[%s1432_s2 + $0x58] sm:$0xff]  ;;  %v492_v45 = vld [vmem:[%s1434_s5] sm:$0xff]  ;;  %v888_v46 = vpack.c.bf16 %v401_v38, %v400_v37  ;;  %v291_v50 = vld [vmem:[%s1432_s2 + $0xe8] sm:$0xff] }
  0x29   :  { %248 = vmatprep.mubr.f32.mxu1 %v1242_v7  ;;  %137 = vmatmul.mubr.f32.gmra.mrb[2].mxu0 %v1247_v8  ;;  %v385_v47 = vld [vmem:[%s1433_s3 + $0x58] sm:$0xff]  ;;  %v290_v49 = vld [vmem:[%s1432_s2 + $0xe0] sm:$0xff]  ;;  %v403_v52 = vld [vmem:[%s1433_s3 + $0xe8] sm:$0xff]  ;;  %v858_v54 = vpack.c.bf16 %v273_v44, %v272_v41 }
  0x2a   :  { %843 = vmatpush3.bf16.msra.mxu0 %v842_v61  ;;  %249 = vmatmul.mubr.f32.gmra.mrb[2].mxu1 %v1247_v8  ;;  %v402_v51 = vld [vmem:[%s1433_s3 + $0xe0] sm:$0xff]  ;;  %v560_v53 = vld [vmem:[%s1435_s6 + $0x8] sm:$0xff]  ;;  %v860_v57 = vpack.c.bf16 %v291_v50, %v290_v49  ;;  %v292_v63 = vld [vmem:[%s1432_s2 + $0xf0] sm:$0xff] }
  0x2b   :  { %875 = vmatpush3.bf16.msra.mxu1 %v874_v0  ;;  %845 = vmatprep.subr.bf16.mxu0 %v844_v1  ;;  %v274_v55 = vld [vmem:[%s1432_s2 + $0x60] sm:$0xff]  ;;  %v275_v58 = vld [vmem:[%s1432_s2 + $0x68] sm:$0xff]  ;;  %v892_v61 = vpack.c.bf16 %v403_v52, %v402_v51  ;;  %v293_v0 = vld [vmem:[%s1432_s2 + $0xf8] sm:$0xff] }
  0x2c   :  { %877 = vmatprep.subr.bf16.mxu1 %v876_v5  ;;  %141 = vmatprep.mubr.f32.mxu0 %v1270_v18  ;;  %v386_v59 = vld [vmem:[%s1433_s3 + $0x60] sm:$0xff]  ;;  %v387_v62 = vld [vmem:[%s1433_s3 + $0x68] sm:$0xff]  ;;  %v404_v1 = vld [vmem:[%s1433_s3 + $0xf0] sm:$0xff]  ;;  %v862_v4 = vpack.c.bf16 %v275_v58, %v274_v55  ;;  %v864_v6 = vpack.c.bf16 %v293_v0, %v292_v63 }
  0x2d   :  { %253 = vmatprep.mubr.f32.mxu1 %v1270_v18  ;;  %142 = vmatmul.mubr.f32.gmra.mrb[4].mxu0 %v1275_v19  ;;  %v559_v60 = vld [vmem:[%s1435_s6] sm:$0xff]  ;;  %v405_v2 = vld [vmem:[%s1433_s3 + $0xf8] sm:$0xff]  ;;  %v561_v3 = vld [vmem:[%s1435_s6 + $0x10] sm:$0xf]  ;;  %v894_v5 = vpack.c.bf16 %v387_v62, %v386_v59 }
  0x2e   :  { %847 = vmatpush3.bf16.msra.mxu0 %v846_v11  ;;  %254 = vmatmul.mubr.f32.gmra.mrb[4].mxu1 %v1275_v19  ;;  %v276_v9 = vld [vmem:[%s1432_s2 + $0x70] sm:$0xff]  ;;  %v277_v10 = vld [vmem:[%s1432_s2 + $0x78] sm:$0xff]  ;;  %v580_v11 = vld [vmem:[%s1436_s7] sm:$0xff]  ;;  %v896_v12 = vpack.c.bf16 %v405_v2, %v404_v1 }
  0x2f   :  { %879 = vmatpush3.bf16.msra.mxu1 %v878_v14  ;;  %849 = vmatprep.subr.bf16.mxu0 %v848_v15  ;;  %v388_v13 = vld [vmem:[%s1433_s3 + $0x70] sm:$0xff]  ;;  %v389_v14 = vld [vmem:[%s1433_s3 + $0x78] sm:$0xff]  ;;  %v866_v15 = vpack.c.bf16 %v277_v10, %v276_v9 }
  0x30   :  { %881 = vmatprep.subr.bf16.mxu1 %v880_v20  ;;  %358 = vmatprep.mubr.f32.mxu0 %v1123_v17  ;;  %v898_v16 = vpack.c.bf16 %v389_v14, %v388_v13  ;;  %v582_v13 = vld [vmem:[%s1436_s7 + $0x10] sm:$0xf] }
  0x31   :  { %470 = vmatprep.mubr.f32.mxu1 %v1123_v17  ;;  %v384_v17 = vld [vmem:[%s1433_s3 + $0x50] sm:$0xff]  ;;  %502 = vperm.xlu1 %902, %v493_v39  }
  0x32   :  { %851 = vmatpush3.bf16.msra.mxu0 %v850_v26  ;;  %497 = vperm.xlu0 %901, %v492_v45   ;;  %v890_v56 = vpack.c.bf16 %v385_v47, %v384_v17 }
  0x33   :  { %883 = vmatpush3.bf16.msra.mxu1 %v882_v28  ;;  %853 = vmatprep.subr.bf16.mxu0 %v852_v29 }
  0x34   :  { %885 = vmatprep.subr.bf16.mxu1 %v884_v33 }
  0x35   :  { %569 = vperm.xlu1 %902, %v560_v53  }
  0x36   :  { %855 = vmatpush3.bf16.msra.mxu0 %v854_v40  ;;  %564 = vperm.xlu0 %901, %v559_v60  }
  0x37   :  { %887 = vmatpush3.bf16.msra.mxu1 %v886_v42  ;;  %857 = vmatprep.subr.bf16.mxu0 %v856_v43 }
  0x38   :  { %889 = vmatprep.subr.bf16.mxu1 %v888_v46 }
  0x39   :  { %574 = vperm.xlu1 %902, %v561_v3  }
  0x3a   :  { %859 = vmatpush3.bf16.msra.mxu0 %v858_v54  ;;  %585 = vperm.xlu0 %901, %v580_v11  }
  0x3b   :  { %891 = vmatpush3.bf16.msra.mxu1 %v890_v56  ;;  %861 = vmatprep.subr.bf16.mxu0 %v860_v57 }
  0x3c   :  { %893 = vmatprep.subr.bf16.mxu1 %v892_v61 }
  0x3e   :  { %863 = vmatpush3.bf16.msra.mxu0 %v862_v4 }
  0x3f   :  { %895 = vmatpush3.bf16.msra.mxu1 %v894_v5  ;;  %865 = vmatprep.subr.bf16.mxu0 %v864_v6 }
  0x40   :  { %897 = vmatprep.subr.bf16.mxu1 %v896_v12  ;;  %v581_v12 = vld [vmem:[%s1436_s7 + $0x8] sm:$0xff] }
  0x42   :  { %867 = vmatpush3.bf16.msra.mxu0 %v866_v15 }
  0x43   :  { %899 = vmatpush3.bf16.msra.mxu1 %v898_v16 }
  0x45   :  { %359 = vmatmul.mubr.f32.vlgmr.msra.gmra.mrb[6].mxu0 %v1193_v48 }
  0x46   :  { %471 = vmatmul.mubr.f32.vlgmr.msra.gmra.mrb[6].mxu1 %v1193_v48  ;;  %363 = vmatprep.mubr.f32.mxu0 %v1242_v7 }
  0x47   :  { %475 = vmatprep.mubr.f32.mxu1 %v1242_v7 }
  0x49   :  { %364 = vmatmul.mubr.f32.gmra.mrb[8].mxu0 %v1247_v8 }
  0x4a   :  { %476 = vmatmul.mubr.f32.gmra.mrb[8].mxu1 %v1247_v8  ;;  %368 = vmatprep.mubr.f32.mxu0 %v1270_v18 }
  0x4b   :  { %480 = vmatprep.mubr.f32.mxu1 %v1270_v18 }
  0x4d   :  { %369 = vmatmul.mubr.f32.gmra.mrb[10].mxu0 %v1275_v19 }
  0x4e   :  { %481 = vmatmul.mubr.f32.gmra.mrb[10].mxu1 %v1275_v19 }
  0xa4   :  { %v508_v39 = vpop.permute.xlu0 %507 }
  0xb0   :  { %v503_v62 = vpop.permute.xlu1 %502 }
  0xb1   :  { %v498_v51 = vpop.permute.xlu0 %497 }
  0xb4   :  { %v570_v14 = vpop.permute.xlu1 %569 }
  0xb5   :  { %v565_v15 = vpop.permute.xlu0 %564 }
  0xb8   :  { %v575_v16 = vpop.permute.xlu1 %574 }
  0xf8   :  { %v640_v20 = vpop.f32.mrb[0].mxu0 }
  0xf9   :  { %v681_v21 = vpop.f32.mrb[0].mxu1  ;;  %v641_v22 = vpop.f32.mrb[1].mxu0 }
  0xfa   :  { %v642_v48 = vadd.f32 %v641_v22, %v640_v20  ;;  %v682_v23 = vpop.f32.mrb[1].mxu1  ;;  %v586_v20 = vpop.permute.xlu0 %585 }
  0xfb   :  { %v683_v24 = vadd.f32 %v682_v23, %v681_v21 }
  0xfc   :  { %v643_v27 = vpop.f32.mrb[2].mxu0 }
  0xfd   :  { %v259_v25 = vmax.f32 %v642_v48, %v683_v24  ;;  %v684_v7 = vpop.f32.mrb[2].mxu1  ;;  %v644_v8 = vpop.f32.mrb[3].mxu0 }
  0xfe   :  { %v685_v26 = vpop.f32.mrb[3].mxu1  ;;  %v645_v29 = vadd.f32 %v644_v8, %v643_v27 }
  0xff   :  { %v686_v28 = vadd.f32 %v685_v26, %v684_v7 }
 0x100   :  { %v646_v32 = vpop.f32.mrb[4].mxu0 }
 0x101   :  { %v687_v30 = vpop.f32.mrb[4].mxu1  ;;  %v260_v18 = vmax.f32 %v645_v29, %v686_v28  ;;  %v647_v34 = vpop.f32.mrb[5].mxu0 }
 0x102   :  { %v688_v31 = vpop.f32.mrb[5].mxu1  ;;  %v648_v19 = vadd.f32 %v647_v34, %v646_v32 }
 0x103   :  { %v689_v33 = vadd.f32 %v688_v31, %v687_v30 }
 0x105   :  { %v261_v35 = vmax.f32 %v648_v19, %v689_v33 }
 0x118   :  { %v722_v36 = vpop.f32.mrb[6].mxu0 }
 0x119   :  { %v763_v37 = vpop.f32.mrb[6].mxu1  ;;  %v723_v38 = vpop.f32.mrb[7].mxu0 }
 0x11a   :  { %v724_v40 = vadd.f32 %v723_v38, %v722_v36  ;;  %v764_v41 = vpop.f32.mrb[7].mxu1 }
 0x11b   :  { %v765_v42 = vadd.f32 %v764_v41, %v763_v37 }
 0x11c   :  { %v725_v43 = vpop.f32.mrb[8].mxu0 }
 0x11d   :  { %v486_v44 = vmax.f32 %v724_v40, %v765_v42  ;;  %v766_v17 = vpop.f32.mrb[8].mxu1  ;;  %v726_v45 = vpop.f32.mrb[9].mxu0 }
 0x11e   :  { %v727_v46 = vadd.f32 %v726_v45, %v725_v43  ;;  %v767_v47 = vpop.f32.mrb[9].mxu1 }
 0x11f   :  { %v489_v49 = vmax.f32 %v259_v25, %v486_v44  ;;  %v768_v50 = vadd.f32 %v767_v47, %v766_v17 }
 0x120   :  { %v728_v52 = vpop.f32.mrb[10].mxu0 }
 0x121   :  { %v487_v53 = vmax.f32 %v727_v46, %v768_v50  ;;  %v769_v54 = vpop.f32.mrb[10].mxu1  ;;  %v729_v55 = vpop.f32.mrb[11].mxu0  ;;  %v510_v56 = vadd.f32 %v498_v51, %v489_v49 }
 0x122   :  { %v730_v57 = vadd.f32 %v729_v55, %v728_v52  ;;  %v770_v58 = vpop.f32.mrb[11].mxu1 }
 0x123   :  { %v490_v59 = vmax.f32 %v260_v18, %v487_v53  ;;  %v771_v60 = vadd.f32 %v770_v58, %v769_v54  ;;  %v513_v61 = vmax.f32 %v510_v56, 0.0 }
 0x125   :  { %v488_v63 = vmax.f32 %v730_v57, %v771_v60  ;;  %516 = vadd.xlane.f32.xlu1 %v513_v61  ;;  %v511_v0 = vadd.f32 %v503_v62, %v490_v59  ;;  %v528_v3 = vmul.f32 %v513_v61, %v513_v61 }
 0x127   :  { %v491_v1 = vmax.f32 %v261_v35, %v488_v63  ;;  %v514_v2 = vmax.f32 %v511_v0, 0.0 }
 0x129   :  { %v512_v4 = vadd.f32 %v508_v39, %v491_v1  ;;  %518 = vadd.xlane.f32.xlu0 %v514_v2  ;;  %531 = vadd.xlane.f32.xlu1 %v528_v3  ;;  %v529_v5 = vmul.f32 %v514_v2, %v514_v2 }
 0x12b   :  { %v515_v6 = vmax.f32 %v512_v4, 0.0 }
 0x12d   :  { %533 = vadd.xlane.f32.xlu0 %v529_v5  ;;  %v530_v9 = vmul.f32 %v515_v6, %v515_v6  ;;  %v521_v11 = vsel %vm520_vm0, %v515_v6, 0.0 }
 0x12f   :  { %v535_v10 = vsel %vm520_vm0, %v530_v9, 0.0 }
 0x130   :  { %536 = vadd.xlane.f32.xlu1 %v535_v10 }
 0x131   :  { %522 = vadd.xlane.f32.xlu0 %v521_v11 }
 0x141   :  { %590 = vperm.xlu1 %902, %v581_v12  }
 0x147   :  { %595 = vperm.xlu0 %901, %v582_v13  }
 0x1b2   :  { %v517_v21 = vpop.xlane.xlu1 %516 }
 0x1b3   :  { %v525_v22 = vmul.f32 0.0078125, %v517_v21 }
 0x1b5   :  { %v541_v24 = vmul.f32 %v525_v22, %v525_v22  ;;  %v553_v37 = vsub.f32 %v513_v61, %v525_v22 }
 0x1b6   :  { %v519_v48 = vpop.xlane.xlu0 %518  ;;  %v532_v23 = vpop.xlane.xlu1 %531 }
 0x1b7   :  { %v526_v25 = vmul.f32 0.0078125, %v519_v48  ;;  %v538_v7 = vmul.f32 0.0078125, %v532_v23 }
 0x1b9   :  { %v544_v26 = vsub.f32 %v538_v7, %v541_v24  ;;  %v542_v28 = vmul.f32 %v526_v25, %v526_v25  ;;  %v554_v40 = vsub.f32 %v514_v2, %v526_v25 }
 0x1ba   :  { %v534_v27 = vpop.xlane.xlu0 %533 }
 0x1bb   :  { %v547_v8 = vadd.f32 1e-05, %v544_v26  ;;  %v539_v29 = vmul.f32 0.0078125, %v534_v27 }
 0x1bd   :  { %903 = vrsqrt.f32 %v547_v8  ;;  %v545_v30 = vsub.f32 %v539_v29, %v542_v28  ;;  %v537_v31 = vpop.xlane.xlu1 %536 }
 0x1be   :  { %v523_v18 = vpop.xlane.xlu0 %522  ;;  %v540_v34 = vmul.f32 0.0078125, %v537_v31 }
 0x1bf   :  { %v548_v32 = vadd.f32 1e-05, %v545_v30  ;;  %v527_v33 = vmul.f32 0.0078125, %v523_v18 }
 0x1c1   :  { %905 = vrsqrt.f32 %v548_v32  ;;  %v543_v19 = vmul.f32 %v527_v33, %v527_v33  ;;  %v591_v45 = vpop.permute.xlu1 %590  ;;  %v555_v46 = vsub.f32 %v515_v6, %v527_v33 }
 0x1c3   :  { %v546_v35 = vsub.f32 %v540_v34, %v543_v19 }
 0x1c5   :  { %v549_v36 = vadd.f32 1e-05, %v546_v35 }
 0x1c6   :  { %v596_v52 = vpop.permute.xlu0 %595 }
 0x1c7   :  { %v904_v38 = vpop.eup %903  ;;  %907 = vrsqrt.f32 %v549_v36 }
 0x1c8   :  { %v556_v39 = vmul.f32 %v904_v38, %v553_v37 }
 0x1ca   :  { %v577_v41 = vmul.f32 %v565_v15, %v556_v39 }
 0x1cb   :  { %v906_v42 = vpop.eup %905 }
 0x1cc   :  { %v557_v43 = vmul.f32 %v906_v42, %v554_v40  ;;  %v598_v44 = vadd.f32 %v586_v20, %v577_v41 }
 0x1ce   :  { %v578_v17 = vmul.f32 %v570_v14, %v557_v43  ;;  %601 = vst [vmem:[%s1437_s8] sm:$0xff] %v598_v44 }
 0x1d0   :  { %v599_v47 = vadd.f32 %v591_v45, %v578_v17 }
 0x1d1   :  { %v908_v49 = vpop.eup %907 }
 0x1d2   :  { %602 = vst [vmem:[%s1437_s8 + $0x8] sm:$0xff] %v599_v47  ;;  %v558_v50 = vmul.f32 %v908_v49, %v555_v46 }
 0x1d4   :  { %v579_v51 = vmul.f32 %v575_v16, %v558_v50 }
 0x1d6   :  { %v600_v53 = vadd.f32 %v596_v52, %v579_v51 }
 0x1d8   :  { %603 = vst [vmem:[%s1437_s8 + $0x10] sm:$0xf] %v600_v53 }

</bundles_post_ra>
